<compile_context>
chip_gen: v7x
topology: tpu7x:2x2x1
jax: 0.10.0
libtpu: 0.0.40
codegen_flags: <defaults>
</compile_context>

<pallas_src>
import functools

import jax
import jax.numpy as jnp
import numpy as np
from jax.experimental import pallas as pl
from jax.experimental.pallas import tpu as pltpu


# ----------------------------- math helpers (kernel + reference) ------------

def _layer_norm(x, g, b, eps=1e-5):
    mu = jnp.mean(x, axis=-1, keepdims=True)
    var = jnp.mean((x - mu) ** 2, axis=-1, keepdims=True)
    return (x - mu) * jax.lax.rsqrt(var + eps) * g + b


def _leaky_relu(x, slope=0.01):
    return jnp.where(x >= 0, x, slope * x)


def _selu(x):
    alpha = 1.6732632423543772848170429916717
    scale = 1.0507009873554804934193349852946
    return scale * jnp.where(x > 0, x, alpha * (jnp.exp(x) - 1.0))


def _gelu_exact(x):
    # F.gelu default = exact erf-based gelu
    return 0.5 * x * (1.0 + jax.lax.erf(x * np.float32(0.7071067811865476)))


# ------------------------------- fused Pallas kernel ------------------------

def _fused_attention_kernel(
        x_ref, bias_ref,
        ln1_g_ref, ln1_b_ref,
        wq_ref, bq_ref, wk_ref, bk_ref, wv_ref, bv_ref,
        wop_ref, bop_ref,
        ln2_g_ref, ln2_b_ref,
        w1_ref, b1_ref, w2_ref, b2_ref,
        outg_ref, outb_ref,
        out_ref,
        x_scr,
        *, n_head, inv_scale, mm_dtype):
    layer = pl.program_id(1)
    n_layer = pl.num_programs(1)

    # Load the (T, D) activation slab into the persistent VMEM scratch at the
    # first layer of this batch element; it stays resident for all layers.
    @pl.when(layer == 0)
    def _():
        x_scr[...] = x_ref[0]

    x = x_scr[...]                                      # (T, D) float32
    xn = _layer_norm(x, ln1_g_ref[0], ln1_b_ref[0])     # outer pre-LN (ln1[i])
    xn_mm = xn.astype(mm_dtype)
    bias = bias_ref[...]                                # (T, T) additive mask

    # Per-head attention.  Head weights are indexed along a leading ref axis
    # (free), so there is no lane-axis slicing, no concat and no transpose of
    # activations; the output projection is accumulated head by head.
    acc = jnp.zeros_like(x)                             # (T, D) float32
    for h in range(n_head):                             # static unroll
        qh = _leaky_relu(
            jnp.dot(xn_mm, wq_ref[0, h], preferred_element_type=jnp.float32)
            + bq_ref[0, h])
        kh = _leaky_relu(
            jnp.dot(xn_mm, wk_ref[0, h], preferred_element_type=jnp.float32)
            + bk_ref[0, h])
        vh = _leaky_relu(
            jnp.dot(xn_mm, wv_ref[0, h], preferred_element_type=jnp.float32)
            + bv_ref[0, h])
        # scores: contract the head dim of q and k directly (no kh.T).
        s = jax.lax.dot_general(
            qh.astype(mm_dtype), kh.astype(mm_dtype),
            (((1,), (1,)), ((), ())),
            preferred_element_type=jnp.float32)
        s = s * inv_scale + bias
        s = s - jnp.max(s, axis=-1, keepdims=True)
        p = jnp.exp(s)
        p = p * pl.reciprocal(jnp.sum(p, axis=-1, keepdims=True), approx=True)
        oh = jnp.dot(p.astype(mm_dtype), vh.astype(mm_dtype),
                     preferred_element_type=jnp.float32)
        acc = acc + jnp.dot(oh.astype(mm_dtype), wop_ref[0, h],
                            preferred_element_type=jnp.float32)

    proj = _leaky_relu(acc + bop_ref[0])
    inter = _layer_norm(xn + proj, ln2_g_ref[0], ln2_b_ref[0])

    h1 = _selu(jnp.dot(inter.astype(mm_dtype), w1_ref[0],
                       preferred_element_type=jnp.float32) + b1_ref[0])
    h2 = jnp.dot(h1.astype(mm_dtype), w2_ref[0],
                 preferred_element_type=jnp.float32) + b2_ref[0]
    x_new = inter + _gelu_exact(h2)
    x_scr[...] = x_new

    # Final output LayerNorm fused into the last layer step.
    @pl.when(layer == n_layer - 1)
    def _():
        out_ref[0] = _layer_norm(x_new, outg_ref[...], outb_ref[...])


# ----------------------------------------------------------------- wrapper

def mask_to_bias(mask_2d):
    """Bool (T, T) mask (True == masked) -> additive float32 bias."""
    return jnp.where(mask_2d, jnp.float32(-1e30), jnp.float32(0.0))


def attention_forward(x, mask_bias, sp, *, n_head):
    """Runs the full layer stack + final LayerNorm in a single pallas_call."""
    B, T, D = x.shape
    L, H = sp["wq"].shape[:2]
    assert H == n_head
    inv_scale = 1.0 / float((D // n_head) ** 0.5)
    mm_dtype = sp["wq"].dtype

    def layer_spec(a):        # stacked per-layer weight: index by layer only
        nz = (0,) * (a.ndim - 1)
        return pl.BlockSpec((1,) + tuple(a.shape[1:]),
                            lambda b, l, _z=nz: (l,) + _z)

    def const_spec(a):        # shared across the whole grid
        nz = (0,) * a.ndim
        return pl.BlockSpec(tuple(a.shape), lambda b, l, _z=nz: _z)

    kernel = functools.partial(
        _fused_attention_kernel,
        n_head=n_head, inv_scale=inv_scale, mm_dtype=mm_dtype)

    operands = (x, mask_bias,
                sp["ln1_g"], sp["ln1_b"],
                sp["wq"], sp["bq"], sp["wk"], sp["bk"], sp["wv"], sp["bv"],
                sp["wop"], sp["bop"],
                sp["ln2_g"], sp["ln2_b"],
                sp["w1"], sp["b1"], sp["w2"], sp["b2"],
                sp["out_g"], sp["out_b"])

    in_specs = [pl.BlockSpec((1, T, D), lambda b, l: (b, 0, 0)),   # activation
                const_spec(mask_bias)]
    in_specs += [layer_spec(sp[k]) for k in
                 ("ln1_g", "ln1_b", "wq", "bq", "wk", "bk", "wv", "bv",
                  "wop", "bop", "ln2_g", "ln2_b", "w1", "b1", "w2", "b2")]
    in_specs += [const_spec(sp["out_g"]), const_spec(sp["out_b"])]

    # TODO(synk): with a caller that donates `x`, input_output_aliases={0: 0}
    # would let the output reuse the input HBM buffer; omitted here because
    # `x` is reused for the reference check below.
    return pl.pallas_call(
        kernel,
        out_shape=jax.ShapeDtypeStruct((B, T, D), jnp.float32),
        grid=(B, L),
        in_specs=in_specs,
        out_specs=pl.BlockSpec((1, T, D), lambda b, l: (b, 0, 0)),
        scratch_shapes=[pltpu.VMEM((T, D), jnp.float32)],
        compiler_params=pltpu.CompilerParams(
            dimension_semantics=("parallel", "arbitrary"),
            vmem_limit_bytes=32 * 1024 * 1024),
    )(*operands)


# ------------------------------------------------------- params & reference

def init_params(key, n_hidden, n_layer, n_head):
    D = n_hidden
    att_dim = (D // n_head) * n_head
    dv_total = (D // 2) * n_head
    cp_out = 2 * att_dim + dv_total

    def xavier(k, fan_in, fan_out, gain=0.1):
        std = gain * np.sqrt(2.0 / (fan_in + fan_out))
        return (std * jax.random.normal(k, (fan_in, fan_out))).astype(jnp.float32)

    def linear_w(k, fan_in, fan_out):
        bound = 1.0 / np.sqrt(fan_in)
        return jax.random.uniform(k, (fan_in, fan_out), jnp.float32, -bound, bound)

    def linear_b(k, fan_in, fan_out):
        bound = 1.0 / np.sqrt(fan_in)
        return jax.random.uniform(k, (1, fan_out), jnp.float32, -bound, bound)

    layers = []
    for _ in range(n_layer):
        key, *ks = jax.random.split(key, 9)
        layers.append(dict(
            ln1_g=jnp.ones((1, D), jnp.float32), ln1_b=jnp.zeros((1, D), jnp.float32),
            w_cp=xavier(ks[0], D, cp_out), b_cp=linear_b(ks[1], D, cp_out),
            w_op=xavier(ks[2], dv_total, D), b_op=linear_b(ks[3], dv_total, D),
            ln2_g=jnp.ones((1, D), jnp.float32), ln2_b=jnp.zeros((1, D), jnp.float32),
            w_mlp1=linear_w(ks[4], D, D), b_mlp1=linear_b(ks[5], D, D),
            w_mlp2=linear_w(ks[6], D, D), b_mlp2=linear_b(ks[7], D, D),
        ))
    return dict(layers=layers,
                out_g=jnp.ones((1, D), jnp.float32),
                out_b=jnp.zeros((1, D), jnp.float32))


def prepare_params(params, *, n_head, mm_dtype=jnp.float32):
    """Stack per-layer weights (leading layer axis) and split them per head."""
    layers = params["layers"]
    D = layers[0]["ln1_g"].shape[-1]
    att_dim = (D // n_head) * n_head
    d = att_dim // n_head
    dv = D // 2

    def stack(fn, dtype=jnp.float32):
        return jnp.stack([fn(p) for p in layers], axis=0).astype(dtype)

    return dict(
        ln1_g=stack(lambda p: p["ln1_g"]),
        ln1_b=stack(lambda p: p["ln1_b"]),
        wq=stack(lambda p: p["w_cp"][:, :att_dim]
                 .reshape(D, n_head, d).transpose(1, 0, 2), mm_dtype),
        bq=stack(lambda p: p["b_cp"][0, :att_dim].reshape(n_head, 1, d)),
        wk=stack(lambda p: p["w_cp"][:, att_dim:2 * att_dim]
                 .reshape(D, n_head, d).transpose(1, 0, 2), mm_dtype),
        bk=stack(lambda p: p["b_cp"][0, att_dim:2 * att_dim].reshape(n_head, 1, d)),
        wv=stack(lambda p: p["w_cp"][:, 2 * att_dim:]
                 .reshape(D, n_head, dv).transpose(1, 0, 2), mm_dtype),
        bv=stack(lambda p: p["b_cp"][0, 2 * att_dim:].reshape(n_head, 1, dv)),
        wop=stack(lambda p: p["w_op"].reshape(n_head, dv, D), mm_dtype),
        bop=stack(lambda p: p["b_op"]),
        ln2_g=stack(lambda p: p["ln2_g"]),
        ln2_b=stack(lambda p: p["ln2_b"]),
        w1=stack(lambda p: p["w_mlp1"], mm_dtype),
        b1=stack(lambda p: p["b_mlp1"]),
        w2=stack(lambda p: p["w_mlp2"], mm_dtype),
        b2=stack(lambda p: p["b_mlp2"]),
        out_g=params["out_g"],
        out_b=params["out_b"],
    )


def ref_forward(x, mask2d, params, n_head):
    """Plain-JAX reference mirroring the PyTorch forward, for verification."""
    B, T, D = x.shape
    att_dim = (D // n_head) * n_head
    dv_total = (D // 2) * n_head
    d = att_dim // n_head
    dv = dv_total // n_head
    scale = (D // n_head) ** 0.5
    for p in params["layers"]:
        xn = _layer_norm(x, p["ln1_g"], p["ln1_b"])
        cp = _leaky_relu(xn @ p["w_cp"] + p["b_cp"])
        q = cp[..., :att_dim]
        k = cp[..., att_dim:2 * att_dim]
        v = cp[..., 2 * att_dim:]
        qh = q.reshape(B, T, n_head, d).transpose(0, 2, 1, 3)
        kh = k.reshape(B, T, n_head, d).transpose(0, 2, 1, 3)
        vh = v.reshape(B, T, n_head, dv).transpose(0, 2, 1, 3)
        s = jnp.einsum("bhqd,bhkd->bhqk", qh, kh) / scale
        s = jnp.where(mask2d[None, None], -jnp.inf, s)
        pm = jax.nn.softmax(s, axis=-1)
        o = jnp.einsum("bhqk,bhkd->bhqd", pm, vh)
        o = o.transpose(0, 2, 1, 3).reshape(B, T, dv_total)
        proj = _leaky_relu(o @ p["w_op"] + p["b_op"])
        inter = _layer_norm(xn + proj, p["ln2_g"], p["ln2_b"])
        h1 = _selu(inter @ p["w_mlp1"] + p["b_mlp1"])
        h2 = h1 @ p["w_mlp2"] + p["b_mlp2"]
        x = inter + _gelu_exact(h2)
    return _layer_norm(x, params["out_g"], params["out_b"])


# ----------------------------------------------------------------------- main

if __name__ == "__main__":
    B, T, D, H, L = 2, 8, 48, 6, 2   # batch, seq, hidden, heads, layers

    key = jax.random.PRNGKey(0)
    kx, kp = jax.random.split(key)
    x = jax.random.normal(kx, (B, T, D), dtype=jnp.float32)

    # causal mask, shared across batch and heads (True == masked).
    causal = jnp.triu(jnp.ones((T, T), dtype=bool), k=1)
    mask_bias = mask_to_bias(causal)           # single (T, T) additive bias

    params = init_params(kp, D, L, H)
    ref = ref_forward(x, causal, params, H)

    # float32 matmul path (v5e-safe, tightest accuracy).
    sp_f32 = prepare_params(params, n_head=H, mm_dtype=jnp.float32)
    out_f32 = jax.block_until_ready(
        attention_forward(x, mask_bias, sp_f32, n_head=H))
    np.testing.assert_allclose(np.asarray(out_f32), np.asarray(ref),
                               rtol=5e-3, atol=5e-3)

    # bf16 matmul-input path (v6e / v7x): halves weight DMA; LN / softmax /
    # residual stream remain float32, so tolerance is only mildly looser.
    sp_bf16 = prepare_params(params, n_head=H, mm_dtype=jnp.bfloat16)
    out_bf16 = jax.block_until_ready(
        attention_forward(x, mask_bias, sp_bf16, n_head=H))
    np.testing.assert_allclose(np.asarray(out_bf16), np.asarray(ref),
                               rtol=5e-2, atol=5e-2)

    print("KERNEL_OK")
</pallas_src>

<mosaic_0001>
module attributes {stable_mosaic.version = 11 : i64} {
  func.func @_fused_attention_kernel(%arg0: i32, %arg1: i32, %arg2: memref<1x8x48xf32, #tpu.memory_space<vmem>>, %arg3: memref<8x8xf32, #tpu.memory_space<vmem>>, %arg4: memref<1x1x48xf32, #tpu.memory_space<vmem>>, %arg5: memref<1x1x48xf32, #tpu.memory_space<vmem>>, %arg6: memref<1x6x48x8xf32, #tpu.memory_space<vmem>>, %arg7: memref<1x6x1x8xf32, #tpu.memory_space<vmem>>, %arg8: memref<1x6x48x8xf32, #tpu.memory_space<vmem>>, %arg9: memref<1x6x1x8xf32, #tpu.memory_space<vmem>>, %arg10: memref<1x6x48x24xf32, #tpu.memory_space<vmem>>, %arg11: memref<1x6x1x24xf32, #tpu.memory_space<vmem>>, %arg12: memref<1x6x24x48xf32, #tpu.memory_space<vmem>>, %arg13: memref<1x1x48xf32, #tpu.memory_space<vmem>>, %arg14: memref<1x1x48xf32, #tpu.memory_space<vmem>>, %arg15: memref<1x1x48xf32, #tpu.memory_space<vmem>>, %arg16: memref<1x48x48xf32, #tpu.memory_space<vmem>>, %arg17: memref<1x1x48xf32, #tpu.memory_space<vmem>>, %arg18: memref<1x48x48xf32, #tpu.memory_space<vmem>>, %arg19: memref<1x1x48xf32, #tpu.memory_space<vmem>>, %arg20: memref<1x48xf32, #tpu.memory_space<vmem>>, %arg21: memref<1x48xf32, #tpu.memory_space<vmem>>, %arg22: memref<1x8x48xf32, #tpu.memory_space<vmem>>, %arg23: memref<8x48xf32, #tpu.memory_space<vmem>>) attributes {dimension_semantics = [#tpu.dimension_semantics<parallel>, #tpu.dimension_semantics<arbitrary>], iteration_bounds = array<i64: 2, 2>, scalar_prefetch = 0 : i64, scratch_operands = 1 : i64, tpu.core_type = #tpu.core_type<tc>, window_params = [{transform_indices = @transform_0, window_bounds = array<i64: 1, 8, 48>}, {pipeline_mode = #tpu.pipeline_mode<synchronous>, transform_indices = @transform_1, window_bounds = array<i64: 8, 8>}, {transform_indices = @transform_2, window_bounds = array<i64: 1, 1, 48>}, {transform_indices = @transform_3, window_bounds = array<i64: 1, 1, 48>}, {transform_indices = @transform_4, window_bounds = array<i64: 1, 6, 48, 8>}, {transform_indices = @transform_5, window_bounds = array<i64: 1, 6, 1, 8>}, {transform_indices = @transform_6, window_bounds = array<i64: 1, 6, 48, 8>}, {transform_indices = @transform_7, window_bounds = array<i64: 1, 6, 1, 8>}, {transform_indices = @transform_8, window_bounds = array<i64: 1, 6, 48, 24>}, {transform_indices = @transform_9, window_bounds = array<i64: 1, 6, 1, 24>}, {transform_indices = @transform_10, window_bounds = array<i64: 1, 6, 24, 48>}, {transform_indices = @transform_11, window_bounds = array<i64: 1, 1, 48>}, {transform_indices = @transform_12, window_bounds = array<i64: 1, 1, 48>}, {transform_indices = @transform_13, window_bounds = array<i64: 1, 1, 48>}, {transform_indices = @transform_14, window_bounds = array<i64: 1, 48, 48>}, {transform_indices = @transform_15, window_bounds = array<i64: 1, 1, 48>}, {transform_indices = @transform_16, window_bounds = array<i64: 1, 48, 48>}, {transform_indices = @transform_17, window_bounds = array<i64: 1, 1, 48>}, {pipeline_mode = #tpu.pipeline_mode<synchronous>, transform_indices = @transform_18, window_bounds = array<i64: 1, 48>}, {pipeline_mode = #tpu.pipeline_mode<synchronous>, transform_indices = @transform_19, window_bounds = array<i64: 1, 48>}, {transform_indices = @transform_20, window_bounds = array<i64: 1, 8, 48>}]} {
    %c0_i32 = arith.constant 0 : i32
    %0 = arith.cmpi eq, %arg1, %c0_i32 : i32
    %1 = arith.extui %0 : i1 to i32
    %c0_i32_0 = arith.constant 0 : i32
    %2 = arith.cmpi ne, %1, %c0_i32_0 : i32
    scf.if %2 {
      %c0_308 = arith.constant 0 : index
      %c0_309 = arith.constant 0 : index
      %c0_310 = arith.constant 0 : index
      %435 = vector.load %arg2[%c0_308, %c0_309, %c0_310] : memref<1x8x48xf32, #tpu.memory_space<vmem>>, vector<1x8x48xf32>
      %436 = vector.shape_cast %435 : vector<1x8x48xf32> to vector<8x48xf32>
      %c0_311 = arith.constant 0 : index
      %c0_312 = arith.constant 0 : index
      %437 = vector.load %arg23[%c0_311, %c0_312] : memref<8x48xf32, #tpu.memory_space<vmem>>, vector<8x48xf32>
      tpu.vector_store %arg23[%c0_311, %c0_312], %436 {strides = array<i32>} : memref<8x48xf32, #tpu.memory_space<vmem>>, vector<8x48xf32>,
    } else {
    }
    %c0 = arith.constant 0 : index
    %c0_1 = arith.constant 0 : index
    %3 = vector.load %arg23[%c0, %c0_1] : memref<8x48xf32, #tpu.memory_space<vmem>>, vector<8x48xf32>
    %c0_2 = arith.constant 0 : index
    %c0_3 = arith.constant 0 : index
    %c0_4 = arith.constant 0 : index
    %4 = vector.load %arg4[%c0_2, %c0_3, %c0_4] : memref<1x1x48xf32, #tpu.memory_space<vmem>>, vector<1x1x48xf32>
    %5 = vector.shape_cast %4 : vector<1x1x48xf32> to vector<1x48xf32>
    %c0_5 = arith.constant 0 : index
    %c0_6 = arith.constant 0 : index
    %c0_7 = arith.constant 0 : index
    %6 = vector.load %arg5[%c0_5, %c0_6, %c0_7] : memref<1x1x48xf32, #tpu.memory_space<vmem>>, vector<1x1x48xf32>
    %7 = vector.shape_cast %6 : vector<1x1x48xf32> to vector<1x48xf32>
    %cst = arith.constant dense<0.000000e+00> : vector<8xf32>
    %8 = vector.multi_reduction <add>, %3, %cst [1] : vector<8x48xf32> to vector<8xf32>
    %9 = vector.shape_cast %8 : vector<8xf32> to vector<8x1xf32>
    %cst_8 = arith.constant 4.800000e+01 : f32
    %10 = vector.broadcast %cst_8 : f32 to vector<8x1xf32>
    %11 = arith.divf %9, %10 : vector<8x1xf32>
    %12 = vector.broadcast %11 : vector<8x1xf32> to vector<8x48xf32>
    %13 = arith.subf %3, %12 : vector<8x48xf32>
    %14 = arith.mulf %13, %13 : vector<8x48xf32>
    %cst_9 = arith.constant dense<0.000000e+00> : vector<8xf32>
    %15 = vector.multi_reduction <add>, %14, %cst_9 [1] : vector<8x48xf32> to vector<8xf32>
    %16 = vector.shape_cast %15 : vector<8xf32> to vector<8x1xf32>
    %cst_10 = arith.constant 4.800000e+01 : f32
    %17 = vector.broadcast %cst_10 : f32 to vector<8x1xf32>
    %18 = arith.divf %16, %17 : vector<8x1xf32>
    %19 = vector.broadcast %11 : vector<8x1xf32> to vector<8x48xf32>
    %20 = arith.subf %3, %19 : vector<8x48xf32>
    %cst_11 = arith.constant 9.99999974E-6 : f32
    %21 = vector.broadcast %cst_11 : f32 to vector<8x1xf32>
    %22 = arith.addf %18, %21 : vector<8x1xf32>
    %23 = math.rsqrt %22 : vector<8x1xf32>
    %24 = vector.broadcast %23 : vector<8x1xf32> to vector<8x48xf32>
    %25 = arith.mulf %20, %24 : vector<8x48xf32>
    %26 = vector.broadcast %5 : vector<1x48xf32> to vector<8x48xf32>
    %27 = arith.mulf %25, %26 : vector<8x48xf32>
    %28 = vector.broadcast %7 : vector<1x48xf32> to vector<8x48xf32>
    %29 = arith.addf %27, %28 : vector<8x48xf32>
    %c0_12 = arith.constant 0 : index
    %c0_13 = arith.constant 0 : index
    %30 = vector.load %arg3[%c0_12, %c0_13] : memref<8x8xf32, #tpu.memory_space<vmem>>, vector<8x8xf32>
    %cst_14 = arith.constant 0.000000e+00 : f32
    %31 = vector.broadcast %cst_14 : f32 to vector<8x48xf32>
    %c0_15 = arith.constant 0 : index
    %c0_16 = arith.constant 0 : index
    %c0_17 = arith.constant 0 : index
    %c0_18 = arith.constant 0 : index
    %32 = vector.load %arg6[%c0_15, %c0_16, %c0_17, %c0_18] : memref<1x6x48x8xf32, #tpu.memory_space<vmem>>, vector<1x1x48x8xf32>
    %33 = vector.shape_cast %32 : vector<1x1x48x8xf32> to vector<48x8xf32>
    %cst_19 = arith.constant dense<0.000000e+00> : vector<8x8xf32>
    %34 = tpu.matmul %29, %33, %cst_19 {dimension_numbers = #tpu.dot_dimension_numbers<[1], [0], [0], [1], [0, 0, 1, 1], [], []>} : vector<8x48xf32>, vector<48x8xf32>, vector<8x8xf32> -> vector<8x8xf32>
    %c0_20 = arith.constant 0 : index
    %c0_21 = arith.constant 0 : index
    %c0_22 = arith.constant 0 : index
    %c0_23 = arith.constant 0 : index
    %35 = vector.load %arg7[%c0_20, %c0_21, %c0_22, %c0_23] : memref<1x6x1x8xf32, #tpu.memory_space<vmem>>, vector<1x1x1x8xf32>
    %36 = vector.shape_cast %35 : vector<1x1x1x8xf32> to vector<1x8xf32>
    %37 = vector.broadcast %36 : vector<1x8xf32> to vector<8x8xf32>
    %38 = arith.addf %34, %37 : vector<8x8xf32>
    %cst_24 = arith.constant 0.000000e+00 : f32
    %39 = vector.broadcast %cst_24 : f32 to vector<8x8xf32>
    %40 = arith.cmpf oge, %38, %39 : vector<8x8xf32>
    %cst_25 = arith.constant 0.00999999977 : f32
    %41 = vector.broadcast %cst_25 : f32 to vector<8x8xf32>
    %42 = arith.mulf %41, %38 : vector<8x8xf32>
    %43 = arith.select %40, %38, %42 : vector<8x8xi1>, vector<8x8xf32>
    %c0_26 = arith.constant 0 : index
    %c0_27 = arith.constant 0 : index
    %c0_28 = arith.constant 0 : index
    %c0_29 = arith.constant 0 : index
    %44 = vector.load %arg8[%c0_26, %c0_27, %c0_28, %c0_29] : memref<1x6x48x8xf32, #tpu.memory_space<vmem>>, vector<1x1x48x8xf32>
    %45 = vector.shape_cast %44 : vector<1x1x48x8xf32> to vector<48x8xf32>
    %cst_30 = arith.constant dense<0.000000e+00> : vector<8x8xf32>
    %46 = tpu.matmul %29, %45, %cst_30 {dimension_numbers = #tpu.dot_dimension_numbers<[1], [0], [0], [1], [0, 0, 1, 1], [], []>} : vector<8x48xf32>, vector<48x8xf32>, vector<8x8xf32> -> vector<8x8xf32>
    %c0_31 = arith.constant 0 : index
    %c0_32 = arith.constant 0 : index
    %c0_33 = arith.constant 0 : index
    %c0_34 = arith.constant 0 : index
    %47 = vector.load %arg9[%c0_31, %c0_32, %c0_33, %c0_34] : memref<1x6x1x8xf32, #tpu.memory_space<vmem>>, vector<1x1x1x8xf32>
    %48 = vector.shape_cast %47 : vector<1x1x1x8xf32> to vector<1x8xf32>
    %49 = vector.broadcast %48 : vector<1x8xf32> to vector<8x8xf32>
    %50 = arith.addf %46, %49 : vector<8x8xf32>
    %cst_35 = arith.constant 0.000000e+00 : f32
    %51 = vector.broadcast %cst_35 : f32 to vector<8x8xf32>
    %52 = arith.cmpf oge, %50, %51 : vector<8x8xf32>
    %cst_36 = arith.constant 0.00999999977 : f32
    %53 = vector.broadcast %cst_36 : f32 to vector<8x8xf32>
    %54 = arith.mulf %53, %50 : vector<8x8xf32>
    %55 = arith.select %52, %50, %54 : vector<8x8xi1>, vector<8x8xf32>
    %c0_37 = arith.constant 0 : index
    %c0_38 = arith.constant 0 : index
    %c0_39 = arith.constant 0 : index
    %c0_40 = arith.constant 0 : index
    %56 = vector.load %arg10[%c0_37, %c0_38, %c0_39, %c0_40] : memref<1x6x48x24xf32, #tpu.memory_space<vmem>>, vector<1x1x48x24xf32>
    %57 = vector.shape_cast %56 : vector<1x1x48x24xf32> to vector<48x24xf32>
    %cst_41 = arith.constant dense<0.000000e+00> : vector<8x24xf32>
    %58 = tpu.matmul %29, %57, %cst_41 {dimension_numbers = #tpu.dot_dimension_numbers<[1], [0], [0], [1], [0, 0, 1, 1], [], []>} : vector<8x48xf32>, vector<48x24xf32>, vector<8x24xf32> -> vector<8x24xf32>
    %c0_42 = arith.constant 0 : index
    %c0_43 = arith.constant 0 : index
    %c0_44 = arith.constant 0 : index
    %c0_45 = arith.constant 0 : index
    %59 = vector.load %arg11[%c0_42, %c0_43, %c0_44, %c0_45] : memref<1x6x1x24xf32, #tpu.memory_space<vmem>>, vector<1x1x1x24xf32>
    %60 = vector.shape_cast %59 : vector<1x1x1x24xf32> to vector<1x24xf32>
    %61 = vector.broadcast %60 : vector<1x24xf32> to vector<8x24xf32>
    %62 = arith.addf %58, %61 : vector<8x24xf32>
    %cst_46 = arith.constant 0.000000e+00 : f32
    %63 = vector.broadcast %cst_46 : f32 to vector<8x24xf32>
    %64 = arith.cmpf oge, %62, %63 : vector<8x24xf32>
    %cst_47 = arith.constant 0.00999999977 : f32
    %65 = vector.broadcast %cst_47 : f32 to vector<8x24xf32>
    %66 = arith.mulf %65, %62 : vector<8x24xf32>
    %67 = arith.select %64, %62, %66 : vector<8x24xi1>, vector<8x24xf32>
    %cst_48 = arith.constant dense<0.000000e+00> : vector<8x8xf32>
    %68 = tpu.matmul %43, %55, %cst_48 {dimension_numbers = #tpu.dot_dimension_numbers<[1], [1], [0], [0], [0, 0, 1, 0], [], []>} : vector<8x8xf32>, vector<8x8xf32>, vector<8x8xf32> -> vector<8x8xf32>
    %cst_49 = arith.constant 0.353553385 : f32
    %69 = vector.broadcast %cst_49 : f32 to vector<8x8xf32>
    %70 = arith.mulf %68, %69 : vector<8x8xf32>
    %71 = arith.addf %70, %30 : vector<8x8xf32>
    %cst_50 = arith.constant dense<0xFF800000> : vector<8xf32>
    %72 = vector.multi_reduction <maximumf>, %71, %cst_50 [1] : vector<8x8xf32> to vector<8xf32>
    %73 = vector.shape_cast %72 : vector<8xf32> to vector<8x1xf32>
    %74 = vector.broadcast %73 : vector<8x1xf32> to vector<8x8xf32>
    %75 = arith.subf %71, %74 : vector<8x8xf32>
    %76 = math.exp %75 : vector<8x8xf32>
    %cst_51 = arith.constant dense<0.000000e+00> : vector<8xf32>
    %77 = vector.multi_reduction <add>, %76, %cst_51 [1] : vector<8x8xf32> to vector<8xf32>
    %78 = vector.shape_cast %77 : vector<8xf32> to vector<8x1xf32>
    %79 = tpu.reciprocal %78 {approx = true} : vector<8x1xf32> -> vector<8x1xf32>
    %80 = vector.broadcast %79 : vector<8x1xf32> to vector<8x8xf32>
    %81 = arith.mulf %76, %80 : vector<8x8xf32>
    %cst_52 = arith.constant dense<0.000000e+00> : vector<8x24xf32>
    %82 = tpu.matmul %81, %67, %cst_52 {dimension_numbers = #tpu.dot_dimension_numbers<[1], [0], [0], [1], [0, 0, 1, 1], [], []>} : vector<8x8xf32>, vector<8x24xf32>, vector<8x24xf32> -> vector<8x24xf32>
    %c0_53 = arith.constant 0 : index
    %c0_54 = arith.constant 0 : index
    %c0_55 = arith.constant 0 : index
    %c0_56 = arith.constant 0 : index
    %83 = vector.load %arg12[%c0_53, %c0_54, %c0_55, %c0_56] : memref<1x6x24x48xf32, #tpu.memory_space<vmem>>, vector<1x1x24x48xf32>
    %84 = vector.shape_cast %83 : vector<1x1x24x48xf32> to vector<24x48xf32>
    %cst_57 = arith.constant dense<0.000000e+00> : vector<8x48xf32>
    %85 = tpu.matmul %82, %84, %cst_57 {dimension_numbers = #tpu.dot_dimension_numbers<[1], [0], [0], [1], [0, 0, 1, 1], [], []>} : vector<8x24xf32>, vector<24x48xf32>, vector<8x48xf32> -> vector<8x48xf32>
    %86 = arith.addf %31, %85 : vector<8x48xf32>
    %c0_58 = arith.constant 0 : index
    %c1 = arith.constant 1 : index
    %c0_59 = arith.constant 0 : index
    %c0_60 = arith.constant 0 : index
    %87 = vector.load %arg6[%c0_58, %c1, %c0_59, %c0_60] : memref<1x6x48x8xf32, #tpu.memory_space<vmem>>, vector<1x1x48x8xf32>
    %88 = vector.shape_cast %87 : vector<1x1x48x8xf32> to vector<48x8xf32>
    %cst_61 = arith.constant dense<0.000000e+00> : vector<8x8xf32>
    %89 = tpu.matmul %29, %88, %cst_61 {dimension_numbers = #tpu.dot_dimension_numbers<[1], [0], [0], [1], [0, 0, 1, 1], [], []>} : vector<8x48xf32>, vector<48x8xf32>, vector<8x8xf32> -> vector<8x8xf32>
    %c0_62 = arith.constant 0 : index
    %c1_63 = arith.constant 1 : index
    %c0_64 = arith.constant 0 : index
    %c0_65 = arith.constant 0 : index
    %90 = vector.load %arg7[%c0_62, %c1_63, %c0_64, %c0_65] : memref<1x6x1x8xf32, #tpu.memory_space<vmem>>, vector<1x1x1x8xf32>
    %91 = vector.shape_cast %90 : vector<1x1x1x8xf32> to vector<1x8xf32>
    %92 = vector.broadcast %91 : vector<1x8xf32> to vector<8x8xf32>
    %93 = arith.addf %89, %92 : vector<8x8xf32>
    %cst_66 = arith.constant 0.000000e+00 : f32
    %94 = vector.broadcast %cst_66 : f32 to vector<8x8xf32>
    %95 = arith.cmpf oge, %93, %94 : vector<8x8xf32>
    %cst_67 = arith.constant 0.00999999977 : f32
    %96 = vector.broadcast %cst_67 : f32 to vector<8x8xf32>
    %97 = arith.mulf %96, %93 : vector<8x8xf32>
    %98 = arith.select %95, %93, %97 : vector<8x8xi1>, vector<8x8xf32>
    %c0_68 = arith.constant 0 : index
    %c1_69 = arith.constant 1 : index
    %c0_70 = arith.constant 0 : index
    %c0_71 = arith.constant 0 : index
    %99 = vector.load %arg8[%c0_68, %c1_69, %c0_70, %c0_71] : memref<1x6x48x8xf32, #tpu.memory_space<vmem>>, vector<1x1x48x8xf32>
    %100 = vector.shape_cast %99 : vector<1x1x48x8xf32> to vector<48x8xf32>
    %cst_72 = arith.constant dense<0.000000e+00> : vector<8x8xf32>
    %101 = tpu.matmul %29, %100, %cst_72 {dimension_numbers = #tpu.dot_dimension_numbers<[1], [0], [0], [1], [0, 0, 1, 1], [], []>} : vector<8x48xf32>, vector<48x8xf32>, vector<8x8xf32> -> vector<8x8xf32>
    %c0_73 = arith.constant 0 : index
    %c1_74 = arith.constant 1 : index
    %c0_75 = arith.constant 0 : index
    %c0_76 = arith.constant 0 : index
    %102 = vector.load %arg9[%c0_73, %c1_74, %c0_75, %c0_76] : memref<1x6x1x8xf32, #tpu.memory_space<vmem>>, vector<1x1x1x8xf32>
    %103 = vector.shape_cast %102 : vector<1x1x1x8xf32> to vector<1x8xf32>
    %104 = vector.broadcast %103 : vector<1x8xf32> to vector<8x8xf32>
    %105 = arith.addf %101, %104 : vector<8x8xf32>
    %cst_77 = arith.constant 0.000000e+00 : f32
    %106 = vector.broadcast %cst_77 : f32 to vector<8x8xf32>
    %107 = arith.cmpf oge, %105, %106 : vector<8x8xf32>
    %cst_78 = arith.constant 0.00999999977 : f32
    %108 = vector.broadcast %cst_78 : f32 to vector<8x8xf32>
    %109 = arith.mulf %108, %105 : vector<8x8xf32>
    %110 = arith.select %107, %105, %109 : vector<8x8xi1>, vector<8x8xf32>
    %c0_79 = arith.constant 0 : index
    %c1_80 = arith.constant 1 : index
    %c0_81 = arith.constant 0 : index
    %c0_82 = arith.constant 0 : index
    %111 = vector.load %arg10[%c0_79, %c1_80, %c0_81, %c0_82] : memref<1x6x48x24xf32, #tpu.memory_space<vmem>>, vector<1x1x48x24xf32>
    %112 = vector.shape_cast %111 : vector<1x1x48x24xf32> to vector<48x24xf32>
    %cst_83 = arith.constant dense<0.000000e+00> : vector<8x24xf32>
    %113 = tpu.matmul %29, %112, %cst_83 {dimension_numbers = #tpu.dot_dimension_numbers<[1], [0], [0], [1], [0, 0, 1, 1], [], []>} : vector<8x48xf32>, vector<48x24xf32>, vector<8x24xf32> -> vector<8x24xf32>
    %c0_84 = arith.constant 0 : index
    %c1_85 = arith.constant 1 : index
    %c0_86 = arith.constant 0 : index
    %c0_87 = arith.constant 0 : index
    %114 = vector.load %arg11[%c0_84, %c1_85, %c0_86, %c0_87] : memref<1x6x1x24xf32, #tpu.memory_space<vmem>>, vector<1x1x1x24xf32>
    %115 = vector.shape_cast %114 : vector<1x1x1x24xf32> to vector<1x24xf32>
    %116 = vector.broadcast %115 : vector<1x24xf32> to vector<8x24xf32>
    %117 = arith.addf %113, %116 : vector<8x24xf32>
    %cst_88 = arith.constant 0.000000e+00 : f32
    %118 = vector.broadcast %cst_88 : f32 to vector<8x24xf32>
    %119 = arith.cmpf oge, %117, %118 : vector<8x24xf32>
    %cst_89 = arith.constant 0.00999999977 : f32
    %120 = vector.broadcast %cst_89 : f32 to vector<8x24xf32>
    %121 = arith.mulf %120, %117 : vector<8x24xf32>
    %122 = arith.select %119, %117, %121 : vector<8x24xi1>, vector<8x24xf32>
    %cst_90 = arith.constant dense<0.000000e+00> : vector<8x8xf32>
    %123 = tpu.matmul %98, %110, %cst_90 {dimension_numbers = #tpu.dot_dimension_numbers<[1], [1], [0], [0], [0, 0, 1, 0], [], []>} : vector<8x8xf32>, vector<8x8xf32>, vector<8x8xf32> -> vector<8x8xf32>
    %cst_91 = arith.constant 0.353553385 : f32
    %124 = vector.broadcast %cst_91 : f32 to vector<8x8xf32>
    %125 = arith.mulf %123, %124 : vector<8x8xf32>
    %126 = arith.addf %125, %30 : vector<8x8xf32>
    %cst_92 = arith.constant dense<0xFF800000> : vector<8xf32>
    %127 = vector.multi_reduction <maximumf>, %126, %cst_92 [1] : vector<8x8xf32> to vector<8xf32>
    %128 = vector.shape_cast %127 : vector<8xf32> to vector<8x1xf32>
    %129 = vector.broadcast %128 : vector<8x1xf32> to vector<8x8xf32>
    %130 = arith.subf %126, %129 : vector<8x8xf32>
    %131 = math.exp %130 : vector<8x8xf32>
    %cst_93 = arith.constant dense<0.000000e+00> : vector<8xf32>
    %132 = vector.multi_reduction <add>, %131, %cst_93 [1] : vector<8x8xf32> to vector<8xf32>
    %133 = vector.shape_cast %132 : vector<8xf32> to vector<8x1xf32>
    %134 = tpu.reciprocal %133 {approx = true} : vector<8x1xf32> -> vector<8x1xf32>
    %135 = vector.broadcast %134 : vector<8x1xf32> to vector<8x8xf32>
    %136 = arith.mulf %131, %135 : vector<8x8xf32>
    %cst_94 = arith.constant dense<0.000000e+00> : vector<8x24xf32>
    %137 = tpu.matmul %136, %122, %cst_94 {dimension_numbers = #tpu.dot_dimension_numbers<[1], [0], [0], [1], [0, 0, 1, 1], [], []>} : vector<8x8xf32>, vector<8x24xf32>, vector<8x24xf32> -> vector<8x24xf32>
    %c0_95 = arith.constant 0 : index
    %c1_96 = arith.constant 1 : index
    %c0_97 = arith.constant 0 : index
    %c0_98 = arith.constant 0 : index
    %138 = vector.load %arg12[%c0_95, %c1_96, %c0_97, %c0_98] : memref<1x6x24x48xf32, #tpu.memory_space<vmem>>, vector<1x1x24x48xf32>
    %139 = vector.shape_cast %138 : vector<1x1x24x48xf32> to vector<24x48xf32>
    %cst_99 = arith.constant dense<0.000000e+00> : vector<8x48xf32>
    %140 = tpu.matmul %137, %139, %cst_99 {dimension_numbers = #tpu.dot_dimension_numbers<[1], [0], [0], [1], [0, 0, 1, 1], [], []>} : vector<8x24xf32>, vector<24x48xf32>, vector<8x48xf32> -> vector<8x48xf32>
    %141 = arith.addf %86, %140 : vector<8x48xf32>
    %c0_100 = arith.constant 0 : index
    %c2 = arith.constant 2 : index
    %c0_101 = arith.constant 0 : index
    %c0_102 = arith.constant 0 : index
    %142 = vector.load %arg6[%c0_100, %c2, %c0_101, %c0_102] : memref<1x6x48x8xf32, #tpu.memory_space<vmem>>, vector<1x1x48x8xf32>
    %143 = vector.shape_cast %142 : vector<1x1x48x8xf32> to vector<48x8xf32>
    %cst_103 = arith.constant dense<0.000000e+00> : vector<8x8xf32>
    %144 = tpu.matmul %29, %143, %cst_103 {dimension_numbers = #tpu.dot_dimension_numbers<[1], [0], [0], [1], [0, 0, 1, 1], [], []>} : vector<8x48xf32>, vector<48x8xf32>, vector<8x8xf32> -> vector<8x8xf32>
    %c0_104 = arith.constant 0 : index
    %c2_105 = arith.constant 2 : index
    %c0_106 = arith.constant 0 : index
    %c0_107 = arith.constant 0 : index
    %145 = vector.load %arg7[%c0_104, %c2_105, %c0_106, %c0_107] : memref<1x6x1x8xf32, #tpu.memory_space<vmem>>, vector<1x1x1x8xf32>
    %146 = vector.shape_cast %145 : vector<1x1x1x8xf32> to vector<1x8xf32>
    %147 = vector.broadcast %146 : vector<1x8xf32> to vector<8x8xf32>
    %148 = arith.addf %144, %147 : vector<8x8xf32>
    %cst_108 = arith.constant 0.000000e+00 : f32
    %149 = vector.broadcast %cst_108 : f32 to vector<8x8xf32>
    %150 = arith.cmpf oge, %148, %149 : vector<8x8xf32>
    %cst_109 = arith.constant 0.00999999977 : f32
    %151 = vector.broadcast %cst_109 : f32 to vector<8x8xf32>
    %152 = arith.mulf %151, %148 : vector<8x8xf32>
    %153 = arith.select %150, %148, %152 : vector<8x8xi1>, vector<8x8xf32>
    %c0_110 = arith.constant 0 : index
    %c2_111 = arith.constant 2 : index
    %c0_112 = arith.constant 0 : index
    %c0_113 = arith.constant 0 : index
    %154 = vector.load %arg8[%c0_110, %c2_111, %c0_112, %c0_113] : memref<1x6x48x8xf32, #tpu.memory_space<vmem>>, vector<1x1x48x8xf32>
    %155 = vector.shape_cast %154 : vector<1x1x48x8xf32> to vector<48x8xf32>
    %cst_114 = arith.constant dense<0.000000e+00> : vector<8x8xf32>
    %156 = tpu.matmul %29, %155, %cst_114 {dimension_numbers = #tpu.dot_dimension_numbers<[1], [0], [0], [1], [0, 0, 1, 1], [], []>} : vector<8x48xf32>, vector<48x8xf32>, vector<8x8xf32> -> vector<8x8xf32>
    %c0_115 = arith.constant 0 : index
    %c2_116 = arith.constant 2 : index
    %c0_117 = arith.constant 0 : index
    %c0_118 = arith.constant 0 : index
    %157 = vector.load %arg9[%c0_115, %c2_116, %c0_117, %c0_118] : memref<1x6x1x8xf32, #tpu.memory_space<vmem>>, vector<1x1x1x8xf32>
    %158 = vector.shape_cast %157 : vector<1x1x1x8xf32> to vector<1x8xf32>
    %159 = vector.broadcast %158 : vector<1x8xf32> to vector<8x8xf32>
    %160 = arith.addf %156, %159 : vector<8x8xf32>
    %cst_119 = arith.constant 0.000000e+00 : f32
    %161 = vector.broadcast %cst_119 : f32 to vector<8x8xf32>
    %162 = arith.cmpf oge, %160, %161 : vector<8x8xf32>
    %cst_120 = arith.constant 0.00999999977 : f32
    %163 = vector.broadcast %cst_120 : f32 to vector<8x8xf32>
    %164 = arith.mulf %163, %160 : vector<8x8xf32>
    %165 = arith.select %162, %160, %164 : vector<8x8xi1>, vector<8x8xf32>
    %c0_121 = arith.constant 0 : index
    %c2_122 = arith.constant 2 : index
    %c0_123 = arith.constant 0 : index
    %c0_124 = arith.constant 0 : index
    %166 = vector.load %arg10[%c0_121, %c2_122, %c0_123, %c0_124] : memref<1x6x48x24xf32, #tpu.memory_space<vmem>>, vector<1x1x48x24xf32>
    %167 = vector.shape_cast %166 : vector<1x1x48x24xf32> to vector<48x24xf32>
    %cst_125 = arith.constant dense<0.000000e+00> : vector<8x24xf32>
    %168 = tpu.matmul %29, %167, %cst_125 {dimension_numbers = #tpu.dot_dimension_numbers<[1], [0], [0], [1], [0, 0, 1, 1], [], []>} : vector<8x48xf32>, vector<48x24xf32>, vector<8x24xf32> -> vector<8x24xf32>
    %c0_126 = arith.constant 0 : index
    %c2_127 = arith.constant 2 : index
    %c0_128 = arith.constant 0 : index
    %c0_129 = arith.constant 0 : index
    %169 = vector.load %arg11[%c0_126, %c2_127, %c0_128, %c0_129] : memref<1x6x1x24xf32, #tpu.memory_space<vmem>>, vector<1x1x1x24xf32>
    %170 = vector.shape_cast %169 : vector<1x1x1x24xf32> to vector<1x24xf32>
    %171 = vector.broadcast %170 : vector<1x24xf32> to vector<8x24xf32>
    %172 = arith.addf %168, %171 : vector<8x24xf32>
    %cst_130 = arith.constant 0.000000e+00 : f32
    %173 = vector.broadcast %cst_130 : f32 to vector<8x24xf32>
    %174 = arith.cmpf oge, %172, %173 : vector<8x24xf32>
    %cst_131 = arith.constant 0.00999999977 : f32
    %175 = vector.broadcast %cst_131 : f32 to vector<8x24xf32>
    %176 = arith.mulf %175, %172 : vector<8x24xf32>
    %177 = arith.select %174, %172, %176 : vector<8x24xi1>, vector<8x24xf32>
    %cst_132 = arith.constant dense<0.000000e+00> : vector<8x8xf32>
    %178 = tpu.matmul %153, %165, %cst_132 {dimension_numbers = #tpu.dot_dimension_numbers<[1], [1], [0], [0], [0, 0, 1, 0], [], []>} : vector<8x8xf32>, vector<8x8xf32>, vector<8x8xf32> -> vector<8x8xf32>
    %cst_133 = arith.constant 0.353553385 : f32
    %179 = vector.broadcast %cst_133 : f32 to vector<8x8xf32>
    %180 = arith.mulf %178, %179 : vector<8x8xf32>
    %181 = arith.addf %180, %30 : vector<8x8xf32>
    %cst_134 = arith.constant dense<0xFF800000> : vector<8xf32>
    %182 = vector.multi_reduction <maximumf>, %181, %cst_134 [1] : vector<8x8xf32> to vector<8xf32>
    %183 = vector.shape_cast %182 : vector<8xf32> to vector<8x1xf32>
    %184 = vector.broadcast %183 : vector<8x1xf32> to vector<8x8xf32>
    %185 = arith.subf %181, %184 : vector<8x8xf32>
    %186 = math.exp %185 : vector<8x8xf32>
    %cst_135 = arith.constant dense<0.000000e+00> : vector<8xf32>
    %187 = vector.multi_reduction <add>, %186, %cst_135 [1] : vector<8x8xf32> to vector<8xf32>
    %188 = vector.shape_cast %187 : vector<8xf32> to vector<8x1xf32>
    %189 = tpu.reciprocal %188 {approx = true} : vector<8x1xf32> -> vector<8x1xf32>
    %190 = vector.broadcast %189 : vector<8x1xf32> to vector<8x8xf32>
    %191 = arith.mulf %186, %190 : vector<8x8xf32>
    %cst_136 = arith.constant dense<0.000000e+00> : vector<8x24xf32>
    %192 = tpu.matmul %191, %177, %cst_136 {dimension_numbers = #tpu.dot_dimension_numbers<[1], [0], [0], [1], [0, 0, 1, 1], [], []>} : vector<8x8xf32>, vector<8x24xf32>, vector<8x24xf32> -> vector<8x24xf32>
    %c0_137 = arith.constant 0 : index
    %c2_138 = arith.constant 2 : index
    %c0_139 = arith.constant 0 : index
    %c0_140 = arith.constant 0 : index
    %193 = vector.load %arg12[%c0_137, %c2_138, %c0_139, %c0_140] : memref<1x6x24x48xf32, #tpu.memory_space<vmem>>, vector<1x1x24x48xf32>
    %194 = vector.shape_cast %193 : vector<1x1x24x48xf32> to vector<24x48xf32>
    %cst_141 = arith.constant dense<0.000000e+00> : vector<8x48xf32>
    %195 = tpu.matmul %192, %194, %cst_141 {dimension_numbers = #tpu.dot_dimension_numbers<[1], [0], [0], [1], [0, 0, 1, 1], [], []>} : vector<8x24xf32>, vector<24x48xf32>, vector<8x48xf32> -> vector<8x48xf32>
    %196 = arith.addf %141, %195 : vector<8x48xf32>
    %c0_142 = arith.constant 0 : index
    %c3 = arith.constant 3 : index
    %c0_143 = arith.constant 0 : index
    %c0_144 = arith.constant 0 : index
    %197 = vector.load %arg6[%c0_142, %c3, %c0_143, %c0_144] : memref<1x6x48x8xf32, #tpu.memory_space<vmem>>, vector<1x1x48x8xf32>
    %198 = vector.shape_cast %197 : vector<1x1x48x8xf32> to vector<48x8xf32>
    %cst_145 = arith.constant dense<0.000000e+00> : vector<8x8xf32>
    %199 = tpu.matmul %29, %198, %cst_145 {dimension_numbers = #tpu.dot_dimension_numbers<[1], [0], [0], [1], [0, 0, 1, 1], [], []>} : vector<8x48xf32>, vector<48x8xf32>, vector<8x8xf32> -> vector<8x8xf32>
    %c0_146 = arith.constant 0 : index
    %c3_147 = arith.constant 3 : index
    %c0_148 = arith.constant 0 : index
    %c0_149 = arith.constant 0 : index
    %200 = vector.load %arg7[%c0_146, %c3_147, %c0_148, %c0_149] : memref<1x6x1x8xf32, #tpu.memory_space<vmem>>, vector<1x1x1x8xf32>
    %201 = vector.shape_cast %200 : vector<1x1x1x8xf32> to vector<1x8xf32>
    %202 = vector.broadcast %201 : vector<1x8xf32> to vector<8x8xf32>
    %203 = arith.addf %199, %202 : vector<8x8xf32>
    %cst_150 = arith.constant 0.000000e+00 : f32
    %204 = vector.broadcast %cst_150 : f32 to vector<8x8xf32>
    %205 = arith.cmpf oge, %203, %204 : vector<8x8xf32>
    %cst_151 = arith.constant 0.00999999977 : f32
    %206 = vector.broadcast %cst_151 : f32 to vector<8x8xf32>
    %207 = arith.mulf %206, %203 : vector<8x8xf32>
    %208 = arith.select %205, %203, %207 : vector<8x8xi1>, vector<8x8xf32>
    %c0_152 = arith.constant 0 : index
    %c3_153 = arith.constant 3 : index
    %c0_154 = arith.constant 0 : index
    %c0_155 = arith.constant 0 : index
    %209 = vector.load %arg8[%c0_152, %c3_153, %c0_154, %c0_155] : memref<1x6x48x8xf32, #tpu.memory_space<vmem>>, vector<1x1x48x8xf32>
    %210 = vector.shape_cast %209 : vector<1x1x48x8xf32> to vector<48x8xf32>
    %cst_156 = arith.constant dense<0.000000e+00> : vector<8x8xf32>
    %211 = tpu.matmul %29, %210, %cst_156 {dimension_numbers = #tpu.dot_dimension_numbers<[1], [0], [0], [1], [0, 0, 1, 1], [], []>} : vector<8x48xf32>, vector<48x8xf32>, vector<8x8xf32> -> vector<8x8xf32>
    %c0_157 = arith.constant 0 : index
    %c3_158 = arith.constant 3 : index
    %c0_159 = arith.constant 0 : index
    %c0_160 = arith.constant 0 : index
    %212 = vector.load %arg9[%c0_157, %c3_158, %c0_159, %c0_160] : memref<1x6x1x8xf32, #tpu.memory_space<vmem>>, vector<1x1x1x8xf32>
    %213 = vector.shape_cast %212 : vector<1x1x1x8xf32> to vector<1x8xf32>
    %214 = vector.broadcast %213 : vector<1x8xf32> to vector<8x8xf32>
    %215 = arith.addf %211, %214 : vector<8x8xf32>
    %cst_161 = arith.constant 0.000000e+00 : f32
    %216 = vector.broadcast %cst_161 : f32 to vector<8x8xf32>
    %217 = arith.cmpf oge, %215, %216 : vector<8x8xf32>
    %cst_162 = arith.constant 0.00999999977 : f32
    %218 = vector.broadcast %cst_162 : f32 to vector<8x8xf32>
    %219 = arith.mulf %218, %215 : vector<8x8xf32>
    %220 = arith.select %217, %215, %219 : vector<8x8xi1>, vector<8x8xf32>
    %c0_163 = arith.constant 0 : index
    %c3_164 = arith.constant 3 : index
    %c0_165 = arith.constant 0 : index
    %c0_166 = arith.constant 0 : index
    %221 = vector.load %arg10[%c0_163, %c3_164, %c0_165, %c0_166] : memref<1x6x48x24xf32, #tpu.memory_space<vmem>>, vector<1x1x48x24xf32>
    %222 = vector.shape_cast %221 : vector<1x1x48x24xf32> to vector<48x24xf32>
    %cst_167 = arith.constant dense<0.000000e+00> : vector<8x24xf32>
    %223 = tpu.matmul %29, %222, %cst_167 {dimension_numbers = #tpu.dot_dimension_numbers<[1], [0], [0], [1], [0, 0, 1, 1], [], []>} : vector<8x48xf32>, vector<48x24xf32>, vector<8x24xf32> -> vector<8x24xf32>
    %c0_168 = arith.constant 0 : index
    %c3_169 = arith.constant 3 : index
    %c0_170 = arith.constant 0 : index
    %c0_171 = arith.constant 0 : index
    %224 = vector.load %arg11[%c0_168, %c3_169, %c0_170, %c0_171] : memref<1x6x1x24xf32, #tpu.memory_space<vmem>>, vector<1x1x1x24xf32>
    %225 = vector.shape_cast %224 : vector<1x1x1x24xf32> to vector<1x24xf32>
    %226 = vector.broadcast %225 : vector<1x24xf32> to vector<8x24xf32>
    %227 = arith.addf %223, %226 : vector<8x24xf32>
    %cst_172 = arith.constant 0.000000e+00 : f32
    %228 = vector.broadcast %cst_172 : f32 to vector<8x24xf32>
    %229 = arith.cmpf oge, %227, %228 : vector<8x24xf32>
    %cst_173 = arith.constant 0.00999999977 : f32
    %230 = vector.broadcast %cst_173 : f32 to vector<8x24xf32>
    %231 = arith.mulf %230, %227 : vector<8x24xf32>
    %232 = arith.select %229, %227, %231 : vector<8x24xi1>, vector<8x24xf32>
    %cst_174 = arith.constant dense<0.000000e+00> : vector<8x8xf32>
    %233 = tpu.matmul %208, %220, %cst_174 {dimension_numbers = #tpu.dot_dimension_numbers<[1], [1], [0], [0], [0, 0, 1, 0], [], []>} : vector<8x8xf32>, vector<8x8xf32>, vector<8x8xf32> -> vector<8x8xf32>
    %cst_175 = arith.constant 0.353553385 : f32
    %234 = vector.broadcast %cst_175 : f32 to vector<8x8xf32>
    %235 = arith.mulf %233, %234 : vector<8x8xf32>
    %236 = arith.addf %235, %30 : vector<8x8xf32>
    %cst_176 = arith.constant dense<0xFF800000> : vector<8xf32>
    %237 = vector.multi_reduction <maximumf>, %236, %cst_176 [1] : vector<8x8xf32> to vector<8xf32>
    %238 = vector.shape_cast %237 : vector<8xf32> to vector<8x1xf32>
    %239 = vector.broadcast %238 : vector<8x1xf32> to vector<8x8xf32>
    %240 = arith.subf %236, %239 : vector<8x8xf32>
    %241 = math.exp %240 : vector<8x8xf32>
    %cst_177 = arith.constant dense<0.000000e+00> : vector<8xf32>
    %242 = vector.multi_reduction <add>, %241, %cst_177 [1] : vector<8x8xf32> to vector<8xf32>
    %243 = vector.shape_cast %242 : vector<8xf32> to vector<8x1xf32>
    %244 = tpu.reciprocal %243 {approx = true} : vector<8x1xf32> -> vector<8x1xf32>
    %245 = vector.broadcast %244 : vector<8x1xf32> to vector<8x8xf32>
    %246 = arith.mulf %241, %245 : vector<8x8xf32>
    %cst_178 = arith.constant dense<0.000000e+00> : vector<8x24xf32>
    %247 = tpu.matmul %246, %232, %cst_178 {dimension_numbers = #tpu.dot_dimension_numbers<[1], [0], [0], [1], [0, 0, 1, 1], [], []>} : vector<8x8xf32>, vector<8x24xf32>, vector<8x24xf32> -> vector<8x24xf32>
    %c0_179 = arith.constant 0 : index
    %c3_180 = arith.constant 3 : index
    %c0_181 = arith.constant 0 : index
    %c0_182 = arith.constant 0 : index
    %248 = vector.load %arg12[%c0_179, %c3_180, %c0_181, %c0_182] : memref<1x6x24x48xf32, #tpu.memory_space<vmem>>, vector<1x1x24x48xf32>
    %249 = vector.shape_cast %248 : vector<1x1x24x48xf32> to vector<24x48xf32>
    %cst_183 = arith.constant dense<0.000000e+00> : vector<8x48xf32>
    %250 = tpu.matmul %247, %249, %cst_183 {dimension_numbers = #tpu.dot_dimension_numbers<[1], [0], [0], [1], [0, 0, 1, 1], [], []>} : vector<8x24xf32>, vector<24x48xf32>, vector<8x48xf32> -> vector<8x48xf32>
    %251 = arith.addf %196, %250 : vector<8x48xf32>
    %c0_184 = arith.constant 0 : index
    %c4 = arith.constant 4 : index
    %c0_185 = arith.constant 0 : index
    %c0_186 = arith.constant 0 : index
    %252 = vector.load %arg6[%c0_184, %c4, %c0_185, %c0_186] : memref<1x6x48x8xf32, #tpu.memory_space<vmem>>, vector<1x1x48x8xf32>
    %253 = vector.shape_cast %252 : vector<1x1x48x8xf32> to vector<48x8xf32>
    %cst_187 = arith.constant dense<0.000000e+00> : vector<8x8xf32>
    %254 = tpu.matmul %29, %253, %cst_187 {dimension_numbers = #tpu.dot_dimension_numbers<[1], [0], [0], [1], [0, 0, 1, 1], [], []>} : vector<8x48xf32>, vector<48x8xf32>, vector<8x8xf32> -> vector<8x8xf32>
    %c0_188 = arith.constant 0 : index
    %c4_189 = arith.constant 4 : index
    %c0_190 = arith.constant 0 : index
    %c0_191 = arith.constant 0 : index
    %255 = vector.load %arg7[%c0_188, %c4_189, %c0_190, %c0_191] : memref<1x6x1x8xf32, #tpu.memory_space<vmem>>, vector<1x1x1x8xf32>
    %256 = vector.shape_cast %255 : vector<1x1x1x8xf32> to vector<1x8xf32>
    %257 = vector.broadcast %256 : vector<1x8xf32> to vector<8x8xf32>
    %258 = arith.addf %254, %257 : vector<8x8xf32>
    %cst_192 = arith.constant 0.000000e+00 : f32
    %259 = vector.broadcast %cst_192 : f32 to vector<8x8xf32>
    %260 = arith.cmpf oge, %258, %259 : vector<8x8xf32>
    %cst_193 = arith.constant 0.00999999977 : f32
    %261 = vector.broadcast %cst_193 : f32 to vector<8x8xf32>
    %262 = arith.mulf %261, %258 : vector<8x8xf32>
    %263 = arith.select %260, %258, %262 : vector<8x8xi1>, vector<8x8xf32>
    %c0_194 = arith.constant 0 : index
    %c4_195 = arith.constant 4 : index
    %c0_196 = arith.constant 0 : index
    %c0_197 = arith.constant 0 : index
    %264 = vector.load %arg8[%c0_194, %c4_195, %c0_196, %c0_197] : memref<1x6x48x8xf32, #tpu.memory_space<vmem>>, vector<1x1x48x8xf32>
    %265 = vector.shape_cast %264 : vector<1x1x48x8xf32> to vector<48x8xf32>
    %cst_198 = arith.constant dense<0.000000e+00> : vector<8x8xf32>
    %266 = tpu.matmul %29, %265, %cst_198 {dimension_numbers = #tpu.dot_dimension_numbers<[1], [0], [0], [1], [0, 0, 1, 1], [], []>} : vector<8x48xf32>, vector<48x8xf32>, vector<8x8xf32> -> vector<8x8xf32>
    %c0_199 = arith.constant 0 : index
    %c4_200 = arith.constant 4 : index
    %c0_201 = arith.constant 0 : index
    %c0_202 = arith.constant 0 : index
    %267 = vector.load %arg9[%c0_199, %c4_200, %c0_201, %c0_202] : memref<1x6x1x8xf32, #tpu.memory_space<vmem>>, vector<1x1x1x8xf32>
    %268 = vector.shape_cast %267 : vector<1x1x1x8xf32> to vector<1x8xf32>
    %269 = vector.broadcast %268 : vector<1x8xf32> to vector<8x8xf32>
    %270 = arith.addf %266, %269 : vector<8x8xf32>
    %cst_203 = arith.constant 0.000000e+00 : f32
    %271 = vector.broadcast %cst_203 : f32 to vector<8x8xf32>
    %272 = arith.cmpf oge, %270, %271 : vector<8x8xf32>
    %cst_204 = arith.constant 0.00999999977 : f32
    %273 = vector.broadcast %cst_204 : f32 to vector<8x8xf32>
    %274 = arith.mulf %273, %270 : vector<8x8xf32>
    %275 = arith.select %272, %270, %274 : vector<8x8xi1>, vector<8x8xf32>
    %c0_205 = arith.constant 0 : index
    %c4_206 = arith.constant 4 : index
    %c0_207 = arith.constant 0 : index
    %c0_208 = arith.constant 0 : index
    %276 = vector.load %arg10[%c0_205, %c4_206, %c0_207, %c0_208] : memref<1x6x48x24xf32, #tpu.memory_space<vmem>>, vector<1x1x48x24xf32>
    %277 = vector.shape_cast %276 : vector<1x1x48x24xf32> to vector<48x24xf32>
    %cst_209 = arith.constant dense<0.000000e+00> : vector<8x24xf32>
    %278 = tpu.matmul %29, %277, %cst_209 {dimension_numbers = #tpu.dot_dimension_numbers<[1], [0], [0], [1], [0, 0, 1, 1], [], []>} : vector<8x48xf32>, vector<48x24xf32>, vector<8x24xf32> -> vector<8x24xf32>
    %c0_210 = arith.constant 0 : index
    %c4_211 = arith.constant 4 : index
    %c0_212 = arith.constant 0 : index
    %c0_213 = arith.constant 0 : index
    %279 = vector.load %arg11[%c0_210, %c4_211, %c0_212, %c0_213] : memref<1x6x1x24xf32, #tpu.memory_space<vmem>>, vector<1x1x1x24xf32>
    %280 = vector.shape_cast %279 : vector<1x1x1x24xf32> to vector<1x24xf32>
    %281 = vector.broadcast %280 : vector<1x24xf32> to vector<8x24xf32>
    %282 = arith.addf %278, %281 : vector<8x24xf32>
    %cst_214 = arith.constant 0.000000e+00 : f32
    %283 = vector.broadcast %cst_214 : f32 to vector<8x24xf32>
    %284 = arith.cmpf oge, %282, %283 : vector<8x24xf32>
    %cst_215 = arith.constant 0.00999999977 : f32
    %285 = vector.broadcast %cst_215 : f32 to vector<8x24xf32>
    %286 = arith.mulf %285, %282 : vector<8x24xf32>
    %287 = arith.select %284, %282, %286 : vector<8x24xi1>, vector<8x24xf32>
    %cst_216 = arith.constant dense<0.000000e+00> : vector<8x8xf32>
    %288 = tpu.matmul %263, %275, %cst_216 {dimension_numbers = #tpu.dot_dimension_numbers<[1], [1], [0], [0], [0, 0, 1, 0], [], []>} : vector<8x8xf32>, vector<8x8xf32>, vector<8x8xf32> -> vector<8x8xf32>
    %cst_217 = arith.constant 0.353553385 : f32
    %289 = vector.broadcast %cst_217 : f32 to vector<8x8xf32>
    %290 = arith.mulf %288, %289 : vector<8x8xf32>
    %291 = arith.addf %290, %30 : vector<8x8xf32>
    %cst_218 = arith.constant dense<0xFF800000> : vector<8xf32>
    %292 = vector.multi_reduction <maximumf>, %291, %cst_218 [1] : vector<8x8xf32> to vector<8xf32>
    %293 = vector.shape_cast %292 : vector<8xf32> to vector<8x1xf32>
    %294 = vector.broadcast %293 : vector<8x1xf32> to vector<8x8xf32>
    %295 = arith.subf %291, %294 : vector<8x8xf32>
    %296 = math.exp %295 : vector<8x8xf32>
    %cst_219 = arith.constant dense<0.000000e+00> : vector<8xf32>
    %297 = vector.multi_reduction <add>, %296, %cst_219 [1] : vector<8x8xf32> to vector<8xf32>
    %298 = vector.shape_cast %297 : vector<8xf32> to vector<8x1xf32>
    %299 = tpu.reciprocal %298 {approx = true} : vector<8x1xf32> -> vector<8x1xf32>
    %300 = vector.broadcast %299 : vector<8x1xf32> to vector<8x8xf32>
    %301 = arith.mulf %296, %300 : vector<8x8xf32>
    %cst_220 = arith.constant dense<0.000000e+00> : vector<8x24xf32>
    %302 = tpu.matmul %301, %287, %cst_220 {dimension_numbers = #tpu.dot_dimension_numbers<[1], [0], [0], [1], [0, 0, 1, 1], [], []>} : vector<8x8xf32>, vector<8x24xf32>, vector<8x24xf32> -> vector<8x24xf32>
    %c0_221 = arith.constant 0 : index
    %c4_222 = arith.constant 4 : index
    %c0_223 = arith.constant 0 : index
    %c0_224 = arith.constant 0 : index
    %303 = vector.load %arg12[%c0_221, %c4_222, %c0_223, %c0_224] : memref<1x6x24x48xf32, #tpu.memory_space<vmem>>, vector<1x1x24x48xf32>
    %304 = vector.shape_cast %303 : vector<1x1x24x48xf32> to vector<24x48xf32>
    %cst_225 = arith.constant dense<0.000000e+00> : vector<8x48xf32>
    %305 = tpu.matmul %302, %304, %cst_225 {dimension_numbers = #tpu.dot_dimension_numbers<[1], [0], [0], [1], [0, 0, 1, 1], [], []>} : vector<8x24xf32>, vector<24x48xf32>, vector<8x48xf32> -> vector<8x48xf32>
    %306 = arith.addf %251, %305 : vector<8x48xf32>
    %c0_226 = arith.constant 0 : index
    %c5 = arith.constant 5 : index
    %c0_227 = arith.constant 0 : index
    %c0_228 = arith.constant 0 : index
    %307 = vector.load %arg6[%c0_226, %c5, %c0_227, %c0_228] : memref<1x6x48x8xf32, #tpu.memory_space<vmem>>, vector<1x1x48x8xf32>
    %308 = vector.shape_cast %307 : vector<1x1x48x8xf32> to vector<48x8xf32>
    %cst_229 = arith.constant dense<0.000000e+00> : vector<8x8xf32>
    %309 = tpu.matmul %29, %308, %cst_229 {dimension_numbers = #tpu.dot_dimension_numbers<[1], [0], [0], [1], [0, 0, 1, 1], [], []>} : vector<8x48xf32>, vector<48x8xf32>, vector<8x8xf32> -> vector<8x8xf32>
    %c0_230 = arith.constant 0 : index
    %c5_231 = arith.constant 5 : index
    %c0_232 = arith.constant 0 : index
    %c0_233 = arith.constant 0 : index
    %310 = vector.load %arg7[%c0_230, %c5_231, %c0_232, %c0_233] : memref<1x6x1x8xf32, #tpu.memory_space<vmem>>, vector<1x1x1x8xf32>
    %311 = vector.shape_cast %310 : vector<1x1x1x8xf32> to vector<1x8xf32>
    %312 = vector.broadcast %311 : vector<1x8xf32> to vector<8x8xf32>
    %313 = arith.addf %309, %312 : vector<8x8xf32>
    %cst_234 = arith.constant 0.000000e+00 : f32
    %314 = vector.broadcast %cst_234 : f32 to vector<8x8xf32>
    %315 = arith.cmpf oge, %313, %314 : vector<8x8xf32>
    %cst_235 = arith.constant 0.00999999977 : f32
    %316 = vector.broadcast %cst_235 : f32 to vector<8x8xf32>
    %317 = arith.mulf %316, %313 : vector<8x8xf32>
    %318 = arith.select %315, %313, %317 : vector<8x8xi1>, vector<8x8xf32>
    %c0_236 = arith.constant 0 : index
    %c5_237 = arith.constant 5 : index
    %c0_238 = arith.constant 0 : index
    %c0_239 = arith.constant 0 : index
    %319 = vector.load %arg8[%c0_236, %c5_237, %c0_238, %c0_239] : memref<1x6x48x8xf32, #tpu.memory_space<vmem>>, vector<1x1x48x8xf32>
    %320 = vector.shape_cast %319 : vector<1x1x48x8xf32> to vector<48x8xf32>
    %cst_240 = arith.constant dense<0.000000e+00> : vector<8x8xf32>
    %321 = tpu.matmul %29, %320, %cst_240 {dimension_numbers = #tpu.dot_dimension_numbers<[1], [0], [0], [1], [0, 0, 1, 1], [], []>} : vector<8x48xf32>, vector<48x8xf32>, vector<8x8xf32> -> vector<8x8xf32>
    %c0_241 = arith.constant 0 : index
    %c5_242 = arith.constant 5 : index
    %c0_243 = arith.constant 0 : index
    %c0_244 = arith.constant 0 : index
    %322 = vector.load %arg9[%c0_241, %c5_242, %c0_243, %c0_244] : memref<1x6x1x8xf32, #tpu.memory_space<vmem>>, vector<1x1x1x8xf32>
    %323 = vector.shape_cast %322 : vector<1x1x1x8xf32> to vector<1x8xf32>
    %324 = vector.broadcast %323 : vector<1x8xf32> to vector<8x8xf32>
    %325 = arith.addf %321, %324 : vector<8x8xf32>
    %cst_245 = arith.constant 0.000000e+00 : f32
    %326 = vector.broadcast %cst_245 : f32 to vector<8x8xf32>
    %327 = arith.cmpf oge, %325, %326 : vector<8x8xf32>
    %cst_246 = arith.constant 0.00999999977 : f32
    %328 = vector.broadcast %cst_246 : f32 to vector<8x8xf32>
    %329 = arith.mulf %328, %325 : vector<8x8xf32>
    %330 = arith.select %327, %325, %329 : vector<8x8xi1>, vector<8x8xf32>
    %c0_247 = arith.constant 0 : index
    %c5_248 = arith.constant 5 : index
    %c0_249 = arith.constant 0 : index
    %c0_250 = arith.constant 0 : index
    %331 = vector.load %arg10[%c0_247, %c5_248, %c0_249, %c0_250] : memref<1x6x48x24xf32, #tpu.memory_space<vmem>>, vector<1x1x48x24xf32>
    %332 = vector.shape_cast %331 : vector<1x1x48x24xf32> to vector<48x24xf32>
    %cst_251 = arith.constant dense<0.000000e+00> : vector<8x24xf32>
    %333 = tpu.matmul %29, %332, %cst_251 {dimension_numbers = #tpu.dot_dimension_numbers<[1], [0], [0], [1], [0, 0, 1, 1], [], []>} : vector<8x48xf32>, vector<48x24xf32>, vector<8x24xf32> -> vector<8x24xf32>
    %c0_252 = arith.constant 0 : index
    %c5_253 = arith.constant 5 : index
    %c0_254 = arith.constant 0 : index
    %c0_255 = arith.constant 0 : index
    %334 = vector.load %arg11[%c0_252, %c5_253, %c0_254, %c0_255] : memref<1x6x1x24xf32, #tpu.memory_space<vmem>>, vector<1x1x1x24xf32>
    %335 = vector.shape_cast %334 : vector<1x1x1x24xf32> to vector<1x24xf32>
    %336 = vector.broadcast %335 : vector<1x24xf32> to vector<8x24xf32>
    %337 = arith.addf %333, %336 : vector<8x24xf32>
    %cst_256 = arith.constant 0.000000e+00 : f32
    %338 = vector.broadcast %cst_256 : f32 to vector<8x24xf32>
    %339 = arith.cmpf oge, %337, %338 : vector<8x24xf32>
    %cst_257 = arith.constant 0.00999999977 : f32
    %340 = vector.broadcast %cst_257 : f32 to vector<8x24xf32>
    %341 = arith.mulf %340, %337 : vector<8x24xf32>
    %342 = arith.select %339, %337, %341 : vector<8x24xi1>, vector<8x24xf32>
    %cst_258 = arith.constant dense<0.000000e+00> : vector<8x8xf32>
    %343 = tpu.matmul %318, %330, %cst_258 {dimension_numbers = #tpu.dot_dimension_numbers<[1], [1], [0], [0], [0, 0, 1, 0], [], []>} : vector<8x8xf32>, vector<8x8xf32>, vector<8x8xf32> -> vector<8x8xf32>
    %cst_259 = arith.constant 0.353553385 : f32
    %344 = vector.broadcast %cst_259 : f32 to vector<8x8xf32>
    %345 = arith.mulf %343, %344 : vector<8x8xf32>
    %346 = arith.addf %345, %30 : vector<8x8xf32>
    %cst_260 = arith.constant dense<0xFF800000> : vector<8xf32>
    %347 = vector.multi_reduction <maximumf>, %346, %cst_260 [1] : vector<8x8xf32> to vector<8xf32>
    %348 = vector.shape_cast %347 : vector<8xf32> to vector<8x1xf32>
    %349 = vector.broadcast %348 : vector<8x1xf32> to vector<8x8xf32>
    %350 = arith.subf %346, %349 : vector<8x8xf32>
    %351 = math.exp %350 : vector<8x8xf32>
    %cst_261 = arith.constant dense<0.000000e+00> : vector<8xf32>
    %352 = vector.multi_reduction <add>, %351, %cst_261 [1] : vector<8x8xf32> to vector<8xf32>
    %353 = vector.shape_cast %352 : vector<8xf32> to vector<8x1xf32>
    %354 = tpu.reciprocal %353 {approx = true} : vector<8x1xf32> -> vector<8x1xf32>
    %355 = vector.broadcast %354 : vector<8x1xf32> to vector<8x8xf32>
    %356 = arith.mulf %351, %355 : vector<8x8xf32>
    %cst_262 = arith.constant dense<0.000000e+00> : vector<8x24xf32>
    %357 = tpu.matmul %356, %342, %cst_262 {dimension_numbers = #tpu.dot_dimension_numbers<[1], [0], [0], [1], [0, 0, 1, 1], [], []>} : vector<8x8xf32>, vector<8x24xf32>, vector<8x24xf32> -> vector<8x24xf32>
    %c0_263 = arith.constant 0 : index
    %c5_264 = arith.constant 5 : index
    %c0_265 = arith.constant 0 : index
    %c0_266 = arith.constant 0 : index
    %358 = vector.load %arg12[%c0_263, %c5_264, %c0_265, %c0_266] : memref<1x6x24x48xf32, #tpu.memory_space<vmem>>, vector<1x1x24x48xf32>
    %359 = vector.shape_cast %358 : vector<1x1x24x48xf32> to vector<24x48xf32>
    %cst_267 = arith.constant dense<0.000000e+00> : vector<8x48xf32>
    %360 = tpu.matmul %357, %359, %cst_267 {dimension_numbers = #tpu.dot_dimension_numbers<[1], [0], [0], [1], [0, 0, 1, 1], [], []>} : vector<8x24xf32>, vector<24x48xf32>, vector<8x48xf32> -> vector<8x48xf32>
    %361 = arith.addf %306, %360 : vector<8x48xf32>
    %c0_268 = arith.constant 0 : index
    %c0_269 = arith.constant 0 : index
    %c0_270 = arith.constant 0 : index
    %362 = vector.load %arg13[%c0_268, %c0_269, %c0_270] : memref<1x1x48xf32, #tpu.memory_space<vmem>>, vector<1x1x48xf32>
    %363 = vector.shape_cast %362 : vector<1x1x48xf32> to vector<1x48xf32>
    %364 = vector.broadcast %363 : vector<1x48xf32> to vector<8x48xf32>
    %365 = arith.addf %361, %364 : vector<8x48xf32>
    %cst_271 = arith.constant 0.000000e+00 : f32
    %366 = vector.broadcast %cst_271 : f32 to vector<8x48xf32>
    %367 = arith.cmpf oge, %365, %366 : vector<8x48xf32>
    %cst_272 = arith.constant 0.00999999977 : f32
    %368 = vector.broadcast %cst_272 : f32 to vector<8x48xf32>
    %369 = arith.mulf %368, %365 : vector<8x48xf32>
    %370 = arith.select %367, %365, %369 : vector<8x48xi1>, vector<8x48xf32>
    %371 = arith.addf %29, %370 : vector<8x48xf32>
    %c0_273 = arith.constant 0 : index
    %c0_274 = arith.constant 0 : index
    %c0_275 = arith.constant 0 : index
    %372 = vector.load %arg14[%c0_273, %c0_274, %c0_275] : memref<1x1x48xf32, #tpu.memory_space<vmem>>, vector<1x1x48xf32>
    %373 = vector.shape_cast %372 : vector<1x1x48xf32> to vector<1x48xf32>
    %c0_276 = arith.constant 0 : index
    %c0_277 = arith.constant 0 : index
    %c0_278 = arith.constant 0 : index
    %374 = vector.load %arg15[%c0_276, %c0_277, %c0_278] : memref<1x1x48xf32, #tpu.memory_space<vmem>>, vector<1x1x48xf32>
    %375 = vector.shape_cast %374 : vector<1x1x48xf32> to vector<1x48xf32>
    %cst_279 = arith.constant dense<0.000000e+00> : vector<8xf32>
    %376 = vector.multi_reduction <add>, %371, %cst_279 [1] : vector<8x48xf32> to vector<8xf32>
    %377 = vector.shape_cast %376 : vector<8xf32> to vector<8x1xf32>
    %cst_280 = arith.constant 4.800000e+01 : f32
    %378 = vector.broadcast %cst_280 : f32 to vector<8x1xf32>
    %379 = arith.divf %377, %378 : vector<8x1xf32>
    %380 = vector.broadcast %379 : vector<8x1xf32> to vector<8x48xf32>
    %381 = arith.subf %371, %380 : vector<8x48xf32>
    %382 = arith.mulf %381, %381 : vector<8x48xf32>
    %cst_281 = arith.constant dense<0.000000e+00> : vector<8xf32>
    %383 = vector.multi_reduction <add>, %382, %cst_281 [1] : vector<8x48xf32> to vector<8xf32>
    %384 = vector.shape_cast %383 : vector<8xf32> to vector<8x1xf32>
    %cst_282 = arith.constant 4.800000e+01 : f32
    %385 = vector.broadcast %cst_282 : f32 to vector<8x1xf32>
    %386 = arith.divf %384, %385 : vector<8x1xf32>
    %387 = vector.broadcast %379 : vector<8x1xf32> to vector<8x48xf32>
    %388 = arith.subf %371, %387 : vector<8x48xf32>
    %cst_283 = arith.constant 9.99999974E-6 : f32
    %389 = vector.broadcast %cst_283 : f32 to vector<8x1xf32>
    %390 = arith.addf %386, %389 : vector<8x1xf32>
    %391 = math.rsqrt %390 : vector<8x1xf32>
    %392 = vector.broadcast %391 : vector<8x1xf32> to vector<8x48xf32>
    %393 = arith.mulf %388, %392 : vector<8x48xf32>
    %394 = vector.broadcast %373 : vector<1x48xf32> to vector<8x48xf32>
    %395 = arith.mulf %393, %394 : vector<8x48xf32>
    %396 = vector.broadcast %375 : vector<1x48xf32> to vector<8x48xf32>
    %397 = arith.addf %395, %396 : vector<8x48xf32>
    %c0_284 = arith.constant 0 : index
    %c0_285 = arith.constant 0 : index
    %c0_286 = arith.constant 0 : index
    %398 = vector.load %arg16[%c0_284, %c0_285, %c0_286] : memref<1x48x48xf32, #tpu.memory_space<vmem>>, vector<1x48x48xf32>
    %399 = vector.shape_cast %398 : vector<1x48x48xf32> to vector<48x48xf32>
    %cst_287 = arith.constant dense<0.000000e+00> : vector<8x48xf32>
    %400 = tpu.matmul %397, %399, %cst_287 {dimension_numbers = #tpu.dot_dimension_numbers<[1], [0], [0], [1], [0, 0, 1, 1], [], []>} : vector<8x48xf32>, vector<48x48xf32>, vector<8x48xf32> -> vector<8x48xf32>
    %c0_288 = arith.constant 0 : index
    %c0_289 = arith.constant 0 : index
    %c0_290 = arith.constant 0 : index
    %401 = vector.load %arg17[%c0_288, %c0_289, %c0_290] : memref<1x1x48xf32, #tpu.memory_space<vmem>>, vector<1x1x48xf32>
    %402 = vector.shape_cast %401 : vector<1x1x48xf32> to vector<1x48xf32>
    %403 = vector.broadcast %402 : vector<1x48xf32> to vector<8x48xf32>
    %404 = arith.addf %400, %403 : vector<8x48xf32>
    %cst_291 = arith.constant 0.000000e+00 : f32
    %405 = vector.broadcast %cst_291 : f32 to vector<8x48xf32>
    %406 = arith.cmpf ogt, %404, %405 : vector<8x48xf32>
    %407 = math.exp %404 : vector<8x48xf32>
    %cst_292 = arith.constant 1.000000e+00 : f32
    %408 = vector.broadcast %cst_292 : f32 to vector<8x48xf32>
    %409 = arith.subf %407, %408 : vector<8x48xf32>
    %cst_293 = arith.constant 1.67326319 : f32
    %410 = vector.broadcast %cst_293 : f32 to vector<8x48xf32>
    %411 = arith.mulf %410, %409 : vector<8x48xf32>
    %412 = arith.select %406, %404, %411 : vector<8x48xi1>, vector<8x48xf32>
    %cst_294 = arith.constant 1.05070102 : f32
    %413 = vector.broadcast %cst_294 : f32 to vector<8x48xf32>
    %414 = arith.mulf %413, %412 : vector<8x48xf32>
    %c0_295 = arith.constant 0 : index
    %c0_296 = arith.constant 0 : index
    %c0_297 = arith.constant 0 : index
    %415 = vector.load %arg18[%c0_295, %c0_296, %c0_297] : memref<1x48x48xf32, #tpu.memory_space<vmem>>, vector<1x48x48xf32>
    %416 = vector.shape_cast %415 : vector<1x48x48xf32> to vector<48x48xf32>
    %cst_298 = arith.constant dense<0.000000e+00> : vector<8x48xf32>
    %417 = tpu.matmul %414, %416, %cst_298 {dimension_numbers = #tpu.dot_dimension_numbers<[1], [0], [0], [1], [0, 0, 1, 1], [], []>} : vector<8x48xf32>, vector<48x48xf32>, vector<8x48xf32> -> vector<8x48xf32>
    %c0_299 = arith.constant 0 : index
    %c0_300 = arith.constant 0 : index
    %c0_301 = arith.constant 0 : index
    %418 = vector.load %arg19[%c0_299, %c0_300, %c0_301] : memref<1x1x48xf32, #tpu.memory_space<vmem>>, vector<1x1x48xf32>
    %419 = vector.shape_cast %418 : vector<1x1x48xf32> to vector<1x48xf32>
    %420 = vector.broadcast %419 : vector<1x48xf32> to vector<8x48xf32>
    %421 = arith.addf %417, %420 : vector<8x48xf32>
    %cst_302 = arith.constant 5.000000e-01 : f32
    %422 = vector.broadcast %cst_302 : f32 to vector<8x48xf32>
    %423 = arith.mulf %422, %421 : vector<8x48xf32>
    %cst_303 = arith.constant 0.707106769 : f32
    %424 = vector.broadcast %cst_303 : f32 to vector<8x48xf32>
    %425 = arith.mulf %421, %424 : vector<8x48xf32>
    %426 = math.erf %425 : vector<8x48xf32>
    %cst_304 = arith.constant 1.000000e+00 : f32
    %427 = vector.broadcast %cst_304 : f32 to vector<8x48xf32>
    %428 = arith.addf %427, %426 : vector<8x48xf32>
    %429 = arith.mulf %423, %428 : vector<8x48xf32>
    %430 = arith.addf %397, %429 : vector<8x48xf32>
    %c0_305 = arith.constant 0 : index
    %c0_306 = arith.constant 0 : index
    %431 = vector.load %arg23[%c0_305, %c0_306] : memref<8x48xf32, #tpu.memory_space<vmem>>, vector<8x48xf32>
    tpu.vector_store %arg23[%c0_305, %c0_306], %430 {strides = array<i32>} : memref<8x48xf32, #tpu.memory_space<vmem>>, vector<8x48xf32>,
    %c1_i32 = arith.constant 1 : i32
    %432 = arith.cmpi eq, %arg1, %c1_i32 : i32
    %433 = arith.extui %432 : i1 to i32
    %c0_i32_307 = arith.constant 0 : i32
    %434 = arith.cmpi ne, %433, %c0_i32_307 : i32
    scf.if %434 {
      %c0_308 = arith.constant 0 : index
      %c0_309 = arith.constant 0 : index
      %435 = vector.load %arg20[%c0_308, %c0_309] : memref<1x48xf32, #tpu.memory_space<vmem>>, vector<1x48xf32>
      %c0_310 = arith.constant 0 : index
      %c0_311 = arith.constant 0 : index
      %436 = vector.load %arg21[%c0_310, %c0_311] : memref<1x48xf32, #tpu.memory_space<vmem>>, vector<1x48xf32>
      %cst_312 = arith.constant dense<0.000000e+00> : vector<8xf32>
      %437 = vector.multi_reduction <add>, %430, %cst_312 [1] : vector<8x48xf32> to vector<8xf32>
      %438 = vector.shape_cast %437 : vector<8xf32> to vector<8x1xf32>
      %cst_313 = arith.constant 4.800000e+01 : f32
      %439 = vector.broadcast %cst_313 : f32 to vector<8x1xf32>
      %440 = arith.divf %438, %439 : vector<8x1xf32>
      %441 = vector.broadcast %440 : vector<8x1xf32> to vector<8x48xf32>
      %442 = arith.subf %430, %441 : vector<8x48xf32>
      %443 = arith.mulf %442, %442 : vector<8x48xf32>
      %cst_314 = arith.constant dense<0.000000e+00> : vector<8xf32>
      %444 = vector.multi_reduction <add>, %443, %cst_314 [1] : vector<8x48xf32> to vector<8xf32>
      %445 = vector.shape_cast %444 : vector<8xf32> to vector<8x1xf32>
      %cst_315 = arith.constant 4.800000e+01 : f32
      %446 = vector.broadcast %cst_315 : f32 to vector<8x1xf32>
      %447 = arith.divf %445, %446 : vector<8x1xf32>
      %448 = vector.broadcast %440 : vector<8x1xf32> to vector<8x48xf32>
      %449 = arith.subf %430, %448 : vector<8x48xf32>
      %cst_316 = arith.constant 9.99999974E-6 : f32
      %450 = vector.broadcast %cst_316 : f32 to vector<8x1xf32>
      %451 = arith.addf %447, %450 : vector<8x1xf32>
      %452 = math.rsqrt %451 : vector<8x1xf32>
      %453 = vector.broadcast %452 : vector<8x1xf32> to vector<8x48xf32>
      %454 = arith.mulf %449, %453 : vector<8x48xf32>
      %455 = vector.broadcast %435 : vector<1x48xf32> to vector<8x48xf32>
      %456 = arith.mulf %454, %455 : vector<8x48xf32>
      %457 = vector.broadcast %436 : vector<1x48xf32> to vector<8x48xf32>
      %458 = arith.addf %456, %457 : vector<8x48xf32>
      %c0_317 = arith.constant 0 : index
      %c0_318 = arith.constant 0 : index
      %c0_319 = arith.constant 0 : index
      %459 = vector.load %arg22[%c0_317, %c0_318, %c0_319] : memref<1x8x48xf32, #tpu.memory_space<vmem>>, vector<1x8x48xf32>
      %460 = vector.shape_cast %459 : vector<1x8x48xf32> to vector<8x48xf32>
      %461 = vector.shape_cast %458 : vector<8x48xf32> to vector<1x8x48xf32>
      tpu.vector_store %arg22[%c0_317, %c0_318, %c0_319], %461 {strides = array<i32>} : memref<1x8x48xf32, #tpu.memory_space<vmem>>, vector<1x8x48xf32>,
    } else {
    }
    return
  }
  func.func @transform_0(%arg0: i32, %arg1: i32) -> (i32, i32, i32) {
    %c0_i32 = arith.constant 0 : i32
    %c0_i32_0 = arith.constant 0 : i32
    %c0_i32_1 = arith.constant 0 : i32
    return %arg0, %c0_i32, %c0_i32_0 : i32, i32, i32
  }
  func.func @transform_1(%arg0: i32, %arg1: i32) -> (i32, i32) {
    %c0_i32 = arith.constant 0 : i32
    %c0_i32_0 = arith.constant 0 : i32
    %c0_i32_1 = arith.constant 0 : i32
    return %c0_i32, %c0_i32_0 : i32, i32
  }
  func.func @transform_2(%arg0: i32, %arg1: i32) -> (i32, i32, i32) {
    %c0_i32 = arith.constant 0 : i32
    %c0_i32_0 = arith.constant 0 : i32
    %c0_i32_1 = arith.constant 0 : i32
    return %arg1, %c0_i32, %c0_i32_0 : i32, i32, i32
  }
  func.func @transform_3(%arg0: i32, %arg1: i32) -> (i32, i32, i32) {
    %c0_i32 = arith.constant 0 : i32
    %c0_i32_0 = arith.constant 0 : i32
    %c0_i32_1 = arith.constant 0 : i32
    return %arg1, %c0_i32, %c0_i32_0 : i32, i32, i32
  }
  func.func @transform_4(%arg0: i32, %arg1: i32) -> (i32, i32, i32, i32) {
    %c0_i32 = arith.constant 0 : i32
    %c0_i32_0 = arith.constant 0 : i32
    %c0_i32_1 = arith.constant 0 : i32
    %c0_i32_2 = arith.constant 0 : i32
    return %arg1, %c0_i32, %c0_i32_0, %c0_i32_1 : i32, i32, i32, i32
  }
  func.func @transform_5(%arg0: i32, %arg1: i32) -> (i32, i32, i32, i32) {
    %c0_i32 = arith.constant 0 : i32
    %c0_i32_0 = arith.constant 0 : i32
    %c0_i32_1 = arith.constant 0 : i32
    %c0_i32_2 = arith.constant 0 : i32
    return %arg1, %c0_i32, %c0_i32_0, %c0_i32_1 : i32, i32, i32, i32
  }
  func.func @transform_6(%arg0: i32, %arg1: i32) -> (i32, i32, i32, i32) {
    %c0_i32 = arith.constant 0 : i32
    %c0_i32_0 = arith.constant 0 : i32
    %c0_i32_1 = arith.constant 0 : i32
    %c0_i32_2 = arith.constant 0 : i32
    return %arg1, %c0_i32, %c0_i32_0, %c0_i32_1 : i32, i32, i32, i32
  }
  func.func @transform_7(%arg0: i32, %arg1: i32) -> (i32, i32, i32, i32) {
    %c0_i32 = arith.constant 0 : i32
    %c0_i32_0 = arith.constant 0 : i32
    %c0_i32_1 = arith.constant 0 : i32
    %c0_i32_2 = arith.constant 0 : i32
    return %arg1, %c0_i32, %c0_i32_0, %c0_i32_1 : i32, i32, i32, i32
  }
  func.func @transform_8(%arg0: i32, %arg1: i32) -> (i32, i32, i32, i32) {
    %c0_i32 = arith.constant 0 : i32
    %c0_i32_0 = arith.constant 0 : i32
    %c0_i32_1 = arith.constant 0 : i32
    %c0_i32_2 = arith.constant 0 : i32
    return %arg1, %c0_i32, %c0_i32_0, %c0_i32_1 : i32, i32, i32, i32
  }
  func.func @transform_9(%arg0: i32, %arg1: i32) -> (i32, i32, i32, i32) {
    %c0_i32 = arith.constant 0 : i32
    %c0_i32_0 = arith.constant 0 : i32
    %c0_i32_1 = arith.constant 0 : i32
    %c0_i32_2 = arith.constant 0 : i32
    return %arg1, %c0_i32, %c0_i32_0, %c0_i32_1 : i32, i32, i32, i32
  }
  func.func @transform_10(%arg0: i32, %arg1: i32) -> (i32, i32, i32, i32) {
    %c0_i32 = arith.constant 0 : i32
    %c0_i32_0 = arith.constant 0 : i32
    %c0_i32_1 = arith.constant 0 : i32
    %c0_i32_2 = arith.constant 0 : i32
    return %arg1, %c0_i32, %c0_i32_0, %c0_i32_1 : i32, i32, i32, i32
  }
  func.func @transform_11(%arg0: i32, %arg1: i32) -> (i32, i32, i32) {
    %c0_i32 = arith.constant 0 : i32
    %c0_i32_0 = arith.constant 0 : i32
    %c0_i32_1 = arith.constant 0 : i32
    return %arg1, %c0_i32, %c0_i32_0 : i32, i32, i32
  }
  func.func @transform_12(%arg0: i32, %arg1: i32) -> (i32, i32, i32) {
    %c0_i32 = arith.constant 0 : i32
    %c0_i32_0 = arith.constant 0 : i32
    %c0_i32_1 = arith.constant 0 : i32
    return %arg1, %c0_i32, %c0_i32_0 : i32, i32, i32
  }
  func.func @transform_13(%arg0: i32, %arg1: i32) -> (i32, i32, i32) {
    %c0_i32 = arith.constant 0 : i32
    %c0_i32_0 = arith.constant 0 : i32
    %c0_i32_1 = arith.constant 0 : i32
    return %arg1, %c0_i32, %c0_i32_0 : i32, i32, i32
  }
  func.func @transform_14(%arg0: i32, %arg1: i32) -> (i32, i32, i32) {
    %c0_i32 = arith.constant 0 : i32
    %c0_i32_0 = arith.constant 0 : i32
    %c0_i32_1 = arith.constant 0 : i32
    return %arg1, %c0_i32, %c0_i32_0 : i32, i32, i32
  }
  func.func @transform_15(%arg0: i32, %arg1: i32) -> (i32, i32, i32) {
    %c0_i32 = arith.constant 0 : i32
    %c0_i32_0 = arith.constant 0 : i32
    %c0_i32_1 = arith.constant 0 : i32
    return %arg1, %c0_i32, %c0_i32_0 : i32, i32, i32
  }
  func.func @transform_16(%arg0: i32, %arg1: i32) -> (i32, i32, i32) {
    %c0_i32 = arith.constant 0 : i32
    %c0_i32_0 = arith.constant 0 : i32
    %c0_i32_1 = arith.constant 0 : i32
    return %arg1, %c0_i32, %c0_i32_0 : i32, i32, i32
  }
  func.func @transform_17(%arg0: i32, %arg1: i32) -> (i32, i32, i32) {
    %c0_i32 = arith.constant 0 : i32
    %c0_i32_0 = arith.constant 0 : i32
    %c0_i32_1 = arith.constant 0 : i32
    return %arg1, %c0_i32, %c0_i32_0 : i32, i32, i32
  }
  func.func @transform_18(%arg0: i32, %arg1: i32) -> (i32, i32) {
    %c0_i32 = arith.constant 0 : i32
    %c0_i32_0 = arith.constant 0 : i32
    %c0_i32_1 = arith.constant 0 : i32
    return %c0_i32, %c0_i32_0 : i32, i32
  }
  func.func @transform_19(%arg0: i32, %arg1: i32) -> (i32, i32) {
    %c0_i32 = arith.constant 0 : i32
    %c0_i32_0 = arith.constant 0 : i32
    %c0_i32_1 = arith.constant 0 : i32
    return %c0_i32, %c0_i32_0 : i32, i32
  }
  func.func @transform_20(%arg0: i32, %arg1: i32) -> (i32, i32, i32) {
    %c0_i32 = arith.constant 0 : i32
    %c0_i32_0 = arith.constant 0 : i32
    %c0_i32_1 = arith.constant 0 : i32
    return %arg0, %c0_i32, %c0_i32_0 : i32, i32, i32
  }
}

</mosaic_0001>

<bundles_post_ra>
// kernel: tpu_custom_call.1
= control target key start
LH: loop header
LB: loop body
LE: loop exit
PB: predicated region body
PF: predicated region fallthrough
CT: control target
= control target key end

     0   :  { %s6504_s0 = inlined_call_operand.vmem [shape: f32[2,8,48], index: 0, kind: input, shape index: {}]   ;;  %s6505_s1 = inlined_call_operand.vmem [shape: f32[8,8], index: 1, kind: input, shape index: {}]   ;;  %s6506_s2 = inlined_call_operand.vmem [shape: f32[2,1,48], index: 2, kind: input, shape index: {}]   ;;  %s6507_s3 = inlined_call_operand.vmem [shape: f32[2,1,48], index: 3, kind: input, shape index: {}]   ;;  %s6508_s4 = inlined_call_operand.vmem [shape: f32[2,6,48,8], index: 4, kind: input, shape index: {}]   ;;  %s6509_s5 = inlined_call_operand.vmem [shape: f32[2,6,1,8], index: 5, kind: input, shape index: {}]   ;;  %s6510_s6 = inlined_call_operand.vmem [shape: f32[2,6,48,8], index: 6, kind: input, shape index: {}]   ;;  %s6511_s7 = inlined_call_operand.vmem [shape: f32[2,6,1,8], index: 7, kind: input, shape index: {}]   ;;  %s6512_s8 = inlined_call_operand.vmem [shape: f32[2,6,48,24], index: 8, kind: input, shape index: {}]   ;;  %s6513_s9 = inlined_call_operand.vmem [shape: f32[2,6,1,24], index: 9, kind: input, shape index: {}]   ;;  %s6514_s10 = inlined_call_operand.vmem [shape: f32[2,6,24,48], index: 10, kind: input, shape index: {}]   ;;  %s6515_s11 = inlined_call_operand.vmem [shape: f32[2,1,48], index: 11, kind: input, shape index: {}]   ;;  %s6516_s12 = inlined_call_operand.vmem [shape: f32[2,1,48], index: 12, kind: input, shape index: {}]   ;;  %s6517_s13 = inlined_call_operand.vmem [shape: f32[2,1,48], index: 13, kind: input, shape index: {}]   ;;  %s6518_s14 = inlined_call_operand.vmem [shape: f32[2,48,48], index: 14, kind: input, shape index: {}]   ;;  %s6519_s15 = inlined_call_operand.vmem [shape: f32[2,1,48], index: 15, kind: input, shape index: {}]   ;;  %s6520_s16 = inlined_call_operand.vmem [shape: f32[2,48,48], index: 16, kind: input, shape index: {}]   ;;  %s6521_s17 = inlined_call_operand.vmem [shape: f32[2,1,48], index: 17, kind: input, shape index: {}]   ;;  %s6522_s18 = inlined_call_operand.vmem [shape: f32[1,48], index: 18, kind: input, shape index: {}]   ;;  %s6523_s19 = inlined_call_operand.vmem [shape: f32[1,48], index: 19, kind: input, shape index: {}]   ;;  %s6524_s20 = inlined_call_operand.hbm [shape: f32[2,8,48], index: 20, kind: output, shape index: {}]  }
   0x1   :  { %6541 = sst [smem:[#allocation19_spill]] %s6504_s0 }
   0x2   :  { %6542 = sst [smem:[#allocation20_spill]] %s6505_s1 }
   0x3   :  { %6543 = sst [smem:[#allocation21_spill]] %s6506_s2 }
   0x4   :  { %6544 = sst [smem:[#allocation22_spill]] %s6507_s3 }
   0x5   :  { %6545 = sst [smem:[#allocation23_spill]] %s6508_s4 }
   0x6   :  { %6546 = sst [smem:[#allocation24_spill]] %s6509_s5 }
   0x7   :  { %6547 = sst [smem:[#allocation25_spill]] %s6510_s6 }
   0x8   :  { %6548 = sst [smem:[#allocation26_spill]] %s6511_s7 }
   0x9   :  { %6549 = sst [smem:[#allocation27_spill]] %s6512_s8 }
   0xa   :  { %6550 = sst [smem:[#allocation28_spill]] %s6513_s9 }
   0xb   :  { %6551 = sst [smem:[#allocation29_spill]] %s6515_s11 }
   0xc   :  { %6552 = sst [smem:[#allocation30_spill]] %s6517_s13 }
   0xd   :  { %6553 = sst [smem:[#allocation31_spill]] %s6518_s14 }
   0xe   :  { %6554 = sst [smem:[#allocation32_spill]] %s6520_s16 }
   0xf   :  { %6555 = sst [smem:[#allocation33_spill]] %s6521_s17 }
  0x10   :  { %6556 = sst [smem:[#allocation34_spill]] %s6522_s18 }
  0x11   :  { %6557 = sst [smem:[#allocation35_spill]] %s6523_s19 }
  0x12   :  { %6558 = sst [smem:[#allocation36_spill]] %s6524_s20 }
  0x13   :  { %25 = vsyncpa [#allocation4], 0 }
  0x14   :  { %27 = vsyncpa [#allocation4 + $0x1], 0  ;;  %s5811_s1 = smov 0   ;;  %s5813_s22 = smov 0  }
  0x15   :  { %s5815_s23 = smov 0   ;;  %s5817_s24 = smov 0  }
  0x16   :  { %s5819_s2 = smov 0   ;;  %s5821_s25 = smov 0  }
  0x17   :  { %s5823_s3 = smov 0   ;;  %s5825_s26 = smov 0  }
  0x18 LB: > { %6559 = sst [smem:[#allocation6_spill]] %s5672_s1  ;;  %s4482_s27 = sadd.s32 4294967295, %s5700_s26   ;;  %s5700_s26 = sphi %s5825_s26, %s33_s26   ;;  %s5696_s3 = sphi %s5823_s3, %s6617_s3   ;;  %s5692_s25 = sphi %s5821_s25, %s6616_s25   ;;  %s5688_s2 = sphi %s5819_s2, %s6615_s2   ;;  %s5684_s24 = sphi %s5817_s24, %s6614_s24   ;;  %s5680_s23 = sphi %s5815_s23, %s6613_s23   ;;  %s5676_s22 = sphi %s5813_s22, %s6612_s22   ;;  %s5672_s1 = sphi %s5811_s1, %s6611_s1  }
  0x19   : > { %6560 = sst [smem:[#allocation7_spill]] %s5676_s22  ;;  %s4483_s28 = sadd.s32 4294967294, %s5700_s26  }
  0x1a   : > { %6561 = sst [smem:[#allocation8_spill]] %s5680_s23  ;;  %s42_s4 = sadd.s32 1, %s5692_s25 }
  0x1b   : > { %6562 = sst [smem:[#allocation9_spill]] %s5684_s24  ;;  %p43_p0 = scmp.ge.s32.totalorder %s42_s4, 2 }
  0x1c   : > { %6563 = sst [smem:[#allocation10_spill]] %s5688_s2  ;;  %s45_s29 = sadd.s32 1, %s5696_s3 }
  0x1d   : > { %6564 = sst [smem:[#allocation11_spill]] %s5692_s25  ;;  %p567_p1 = scmp.ne.s32.totalorder %s5680_s23, %s5676_s22 }
  0x1e   : > { %6565 = sst [smem:[#allocation12_spill]] %s5696_s3  ;;  %p568_p2 = scmp.eq.s32.totalorder %s4482_s27, 3 }
  0x1f   : > { %6566 = sst [smem:[#allocation13_spill]] %s5700_s26  ;;  %s6619_s4 = smov (%p43_p0, %s42_s4), 0 }
  0x20   : > { %6567 = sst [smem:[#allocation14_spill]] %s6619_s4  ;;  %s6621_s29 = smov (!%p43_p0, %s45_s29), %s5696_s3 }
  0x21   : > { %p5860_p3 = por %p568_p2, %p567_p1  ;;  %p573_p4 = scmp.ne.s32.totalorder %s5676_s22, %s5672_s1 }
  0x22   : > { %p47_p5 = scmp.ge.s32.totalorder %s6621_s29, 2  ;;  %p574_p6 = scmp.eq.s32.totalorder %s4483_s28, 3 }
  0x23   : > { %s6568_s30 = scalar_select %p5860_p3, 1, 0 }
  0x24   : > { %p4486_p7 = scmp.ge.s32.totalorder %s5700_s26, 1  ;;  %p719_p8 = scmp.lt.s32.totalorder %s5700_s26, 5 }
  0x25   : > { %6569 = sst [smem:[#allocation15_spill]] %s6568_s30  ;;  %s6623_s29 = smov (%p47_p5, %s6621_s29), 0 }
  0x26   : > { %6570 = sst [smem:[#allocation16_spill]] %s6623_s29  ;;  %p5870_p9 = por %p574_p6, %p573_p4 }
  0x27   : > { %p720_p10 = pnand %p4486_p7, %p719_p8  ;;  %s554_s21 = ssub.s32 %s5696_s3, %s6623_s29 }
  0x28   : > { %s6571_s0 = scalar_select %p5870_p9, 1, 0 }
  0x29   : > { %s557_s27 = sadd.s32 1, %s5680_s23  ;;  %p555_p11 = scmp.eq.s32.totalorder %s554_s21, 0 }
  0x2a   : > { %6572 = sst [smem:[#allocation17_spill]] %s6571_s0  ;;  %723 = sbr.rel (%p720_p10) target bundleno = 7344 (0x1cb0), region = 100 }
  0x2b   : > { %s5878_s4 = scalar_select %p555_p11, %s5680_s23, %s557_s27  }
  0x2c   : > { %s6531_s28 = sand.u32 (!%p720_p10), 1, %s5676_s22   ;;  %p839_p12 = scmp.lt.s32.totalorder (!%p720_p10), %s5688_s2, 1 }
  0x2d   : > { %6573 = sst [smem:[#allocation18_spill]] %s5878_s4  ;;  %s5884_s25 = sshll.u32 (!%p720_p10), %s6531_s28, 3 }
  0x2e   : > { %p843_p13 = scmp.lt.s32.totalorder (!%p720_p10), %s5684_s24, 1  ;;  %s6574_s3 = sld [smem:[#allocation19_spill]] (!%p720_p10) }
  0x2f   : > { %s6578_s27 = sld [smem:[#allocation23_spill]] (!%p720_p10)  ;;  %s6579_s6 = sld [smem:[#allocation25_spill]] (!%p720_p10) }
  0x30   : > { %s6580_s5 = sld [smem:[#allocation24_spill]] (!%p720_p10)  ;;  %s6581_s7 = sld [smem:[#allocation26_spill]] (!%p720_p10) }
  0x31   : > { %s840_s0 = scalar_select %p839_p12, %s5688_s2, 1 }
  0x32   : > { %s5889_s1 = scalar_select %p843_p13, %s5684_s24, 1 }
  0x33   : > { %s4488_s21 = sshll.u32 %s840_s0, 3  ;;  %s6582_s8 = sld [smem:[#allocation27_spill]] }
  0x34   : > { %s842_s4 = scalar_lea.vmem %s6574_s3, %s4488_s21  ;;  %s5493_s18 = smul.u32 288, %s5889_s1 }
  0x35   : > { %s5494_s24 = smul.u32 6, %s5889_s1  ;;  %s6583_s9 = sld [smem:[#allocation28_spill]] }
  0x36   : > { %s5911_s3 = scalar_lea.vmem %s6578_s27, %s5493_s18  ;;  %s5916_s28 = scalar_lea.vmem %s6579_s6, %s5493_s18 }
  0x37   : > { %s5921_s30 = scalar_lea.vmem %s6580_s5, %s5494_s24  ;;  %s5926_s17 = scalar_lea.vmem %s6581_s7, %s5494_s24 }
  0x38   : > { %s5495_s26 = smul.u32 144, %s5889_s1  ;;  %s897_s19 = scalar_lea.vmem %s6519_s15, %s5889_s1 }
  0x39   : > { %s5931_s29 = scalar_lea.vmem %s6582_s8, %s5493_s18  ;;  %s5496_s16 = smul.u32 48, %s5889_s1 }
  0x3a   : > { %s5951_s18 = scalar_lea.vmem %s6514_s10, %s5495_s26  ;;  %s6585_s8 = sld [smem:[#allocation31_spill]] }
  0x3b   : > { %s5936_s23 = scalar_lea.vmem %s6583_s9, %s5494_s24  ;;  %s6586_s2 = sld [smem:[#allocation32_spill]] }
  0x3c   : > { %s6587_s13 = sld [smem:[#allocation33_spill]]  ;;  %s838_s11 = scalar_lea.vmem [#allocation3], %s5884_s25 }
  0x3d   : > { %s6588_s26 = sld [smem:[#allocation9_spill]] }
  0x40   : > { %s5960_s9 = scalar_lea.vmem %s6585_s8, %s5496_s16 }
  0x41   : > { %s5965_s5 = scalar_lea.vmem %s6586_s2, %s5496_s16 }
  0x42   : > { %s905_s7 = scalar_lea.vmem %s6587_s13, %s5889_s1 }
  0x43   : > { %p4495_p0 = scmp.ne.s32.totalorder %s6588_s26, 0 }
  0x44   : > { %v910_v0 = vld [vmem:[%s842_s4] sm:$0xff] (!%p4495_p0)  ;;  %vm911_vm0 = vcmask (!%p4495_p0), 392192  }
  0x45   : > { %909 = sbr.rel (%p4495_p0) target bundleno = 76 (0x4c), region = 104  ;;  %912 = vst.msk [vmem:[#allocation2] sm:$0xff] (!%p4495_p0), %vm911_vm0, %v910_v0 }
  0x4c PF: > { %v913_v1 = vld [vmem:[#allocation2] sm:$0xff]  ;;  %vm916_vm1 = vcmask 392192   ;;  %v947_v9 = vld [vmem:[%s5911_s3 + $0x8] sm:$0xff]  ;;  %v5702_v13 = vmov 0.0|0.0   ;;  %v948_v15 = vld [vmem:[%s5911_s3 + $0x10] sm:$0xff]  ;;  %vm5703_vm2 = vmmov 0   ;;  %s6596_s6 = scalar_lea.vmem %s6516_s12, %s5889_s1 }
  0x4d   : > { %v917_v2 = vsel %vm916_vm1, %v913_v1, 0.0  ;;  %v946_v8 = vld [vmem:[%s5911_s3] sm:$0xff]  ;;  %v1036_v12 = vld [vmem:[%s5916_s28 + $0x8] sm:$0xff]  ;;  %5295 = vmatprep.subr.bf16.mxu0 %v5702_v13  ;;  %5304 = vmatprep.subr.bf16.mxu1 %v5702_v13  ;;  %v949_v16 = vld [vmem:[%s5911_s3 + $0x18] sm:$0xff]  ;;  %v5704_v27 = vmov 0.0   ;;  %s6589_s4 = sld [smem:[#allocation21_spill]] }
  0x4e   : > { %918 = vadd.xlane.f32.xlu0 %v917_v2  ;;  %v5296_v10 = vpack.c.bf16 %v947_v9, %v946_v8  ;;  %v1035_v11 = vld [vmem:[%s5916_s28] sm:$0xff]  ;;  %v5299_v17 = vpack.c.bf16 %v949_v16, %v948_v15  ;;  %v1037_v18 = vld [vmem:[%s5916_s28 + $0x10] sm:$0xff]  ;;  %v1038_v19 = vld [vmem:[%s5916_s28 + $0x18] sm:$0xff]  ;;  %4893 = vmatprep.mubr.msk.f32.mxu0 %vm5703_vm2, %v5704_v27  ;;  %s6591_s0 = sld [smem:[#allocation22_spill]]  ;;  %vm1207_vm4 = vcmask 64512   ;;  %s6593_s20 = sld [smem:[#allocation20_spill]] }
  0x4f   : > { %v5305_v14 = vpack.c.bf16 %v1036_v12, %v1035_v11  ;;  %v5308_v20 = vpack.c.bf16 %v1038_v19, %v1037_v18  ;;  %v950_v21 = vld [vmem:[%s5911_s3 + $0x20] sm:$0xff]  ;;  %v951_v22 = vld [vmem:[%s5911_s3 + $0x28] sm:$0xff]  ;;  %4908 = vmatprep.mubr.msk.f32.mxu1 %vm5703_vm2, %v5704_v27  ;;  %v1123_v40 = vld [vmem:[%s5931_s29 + $0x10] sm:$0xff]  ;;  %vm1803_vm8 = vcmask 195584   ;;  %s6597_s13 = sld [smem:[#allocation30_spill]] }
  0x50   : > { %5297 = vmatpush3.bf16.msra.mxu0 %v5296_v10  ;;  %v5302_v23 = vpack.c.bf16 %v951_v22, %v950_v21  ;;  %v1039_v24 = vld [vmem:[%s5916_s28 + $0x20] sm:$0xff]  ;;  %v1040_v25 = vld [vmem:[%s5916_s28 + $0x28] sm:$0xff]  ;;  %v1124_v41 = vld [vmem:[%s5931_s29 + $0x18] sm:$0xff] }
  0x51   : > { %5306 = vmatpush3.bf16.msra.mxu1 %v5305_v14  ;;  %5298 = vmatprep.subr.bf16.mxu0 %v5702_v13  ;;  %v5311_v26 = vpack.c.bf16 %v1040_v25, %v1039_v24  ;;  %v1121_v34 = vld [vmem:[%s5931_s29] sm:$0xff]  ;;  %v1122_v35 = vld [vmem:[%s5931_s29 + $0x8] sm:$0xff]  ;;  %v5317_v42 = vpack.c.bf16 %v1124_v41, %v1123_v40  ;;  %v4516_v46 = vld [vmem:[%s5916_s28 + $0x30] sm:$0xff] }
  0x52   : > { %5307 = vmatprep.subr.bf16.mxu1 %v5702_v13  ;;  %v5314_v38 = vpack.c.bf16 %v1122_v35, %v1121_v34  ;;  %v1125_v43 = vld [vmem:[%s5931_s29 + $0x20] sm:$0xff]  ;;  %v1126_v44 = vld [vmem:[%s5931_s29 + $0x28] sm:$0xff]  ;;  %v4517_v47 = vld [vmem:[%s5916_s28 + $0x38] sm:$0xff] }
  0x53   : > { %s6590_s2 = scalar_lea.vmem %s6589_s4, %s5889_s1  ;;  %v5320_v45 = vpack.c.bf16 %v1126_v44, %v1125_v43  ;;  %v5332_v48 = vpack.c.bf16 %v4517_v47, %v4516_v46  ;;  %v4518_v49 = vld [vmem:[%s5916_s28 + $0x40] sm:$0xff]  ;;  %v4519_v50 = vld [vmem:[%s5916_s28 + $0x48] sm:$0xff]  ;;  %v4520_v52 = vld [vmem:[%s5916_s28 + $0x50] sm:$0xff] }
  0x54   : > { %5300 = vmatpush3.bf16.msra.mxu0 %v5299_v17  ;;  %v4496_v32 = vld [vmem:[%s6590_s2] ss:$0 sm:$0xff]  ;;  %s6592_s14 = scalar_lea.vmem %s6591_s0, %s5889_s1  ;;  %v5335_v51 = vpack.c.bf16 %v4519_v50, %v4518_v49  ;;  %v4521_v53 = vld [vmem:[%s5916_s28 + $0x58] sm:$0xff]  ;;  %v4523_v9 = vld [vmem:[%s5926_s17 + $0x1] ss:$0 sm:$0xff] }
  0x55   : > { %5309 = vmatpush3.bf16.msra.mxu1 %v5308_v20  ;;  %5301 = vmatprep.subr.bf16.mxu0 %v5702_v13  ;;  %v4497_v36 = vld [vmem:[%s6592_s14] ss:$0 sm:$0xff]  ;;  %v5338_v54 = vpack.c.bf16 %v4521_v53, %v4520_v52  ;;  %v4510_v35 = vld [vmem:[%s5911_s3 + $0x48] sm:$0xff]  ;;  %v4525_v41 = vld [vmem:[%s5931_s29 + $0x30] sm:$0xff] }
  0x56   : > { %5310 = vmatprep.subr.bf16.mxu1 %v5702_v13  ;;  %v4498_v55 = vld [vmem:[%s5921_s30] ss:$0 sm:$0xff]  ;;  %v4529_v47 = vld [vmem:[%s5931_s29 + $0x50] sm:$0xff] }
  0x57   : > { %v4500_v56 = vld [vmem:[%s5926_s17] ss:$0 sm:$0xff]  ;;  %v1372_v53 = vld [vmem:[%s5951_s18 + $0x10] sm:$0xff] }
  0x58   : > { %5303 = vmatpush3.bf16.msra.mxu0 %v5302_v23  ;;  %v6060_v17 = vld [vmem:[%s6593_s20] sm:$0xff] }
  0x59   : > { %5312 = vmatpush3.bf16.msra.mxu1 %v5311_v26  ;;  %5313 = vmatprep.subr.bf16.mxu0 %v5702_v13  ;;  %v4509_v34 = vld [vmem:[%s5911_s3 + $0x40] sm:$0xff] }
  0x5a   : > { %4926 = vmatprep.subr.mxu1 %v5704_v27  ;;  %v4527_v44 = vld [vmem:[%s5931_s29 + $0x40] sm:$0xff] }
  0x5b   : > { %v1370_v50 = vld [vmem:[%s5951_s18] sm:$0xff] }
  0xdb   : > { %v919_v3 = vpop.xlane.xlu0 %918 }
  0xdc   : > { %v921_v4 = vmul.f32 0.020833334, %v919_v3  ;;  %v4502_v3 = vld [vmem:[%s5936_s23] ss:$0 sm:$0xff] }
  0xde   : > { %v922_v5 = vsub.f32 %v913_v1, %v921_v4 }
  0xe0   : > { %v923_v6 = vmul.f32 %v922_v5, %v922_v5 }
  0xe2   : > { %v924_v7 = vsel %vm916_vm1, %v923_v6, 0.0 }
  0xe3   : > { %925 = vadd.xlane.f32.xlu0 %v924_v7 }
 0x170   : > { %v926_v28 = vpop.xlane.xlu0 %925 }
 0x171   : > { %v927_v29 = vmul.f32 0.020833334, %v926_v28 }
 0x173   : > { %v928_v30 = vadd.f32 1e-05, %v927_v29  ;;  %v4507_v29 = vld [vmem:[%s5911_s3 + $0x30] sm:$0xff] }
 0x175   : > { %5571 = vrsqrt.f32 %v928_v30  ;;  %v4508_v30 = vld [vmem:[%s5911_s3 + $0x38] sm:$0xff] }
 0x17f   : > { %v5572_v31 = vpop.eup %5571 }
 0x180   : > { %v930_v33 = vmul.f32 %v5572_v31, %v922_v5 }
 0x182   : > { %v937_v37 = vmul.f32 %v4496_v32, %v930_v33  ;;  %v5323_v32 = vpack.c.bf16 %v4508_v30, %v4507_v29 }
 0x184   : > { %v6011_v39 = vadd.f32 %v4497_v36, %v937_v37  ;;  %v5326_v36 = vpack.c.bf16 %v4510_v35, %v4509_v34  ;;  %v4511_v37 = vld [vmem:[%s5911_s3 + $0x50] sm:$0xff]  ;;  %v4537_v35 = vld [vmem:[%s5951_s18 + $0x18] sm:$0xff] }
 0x186   : > { %4894 = vmatmul.mubr.msk.f32.vlgmr.msra.gmra.mrb[0].mxu0 %vm916_vm1, %v6011_v39  ;;  %4909 = vmatmul.mubr.msk.f32.vlgmr.msra.gmra.mrb[0].mxu1 %vm916_vm1, %v6011_v39 }
 0x187   : > { %5315 = vmatpush3.bf16.msra.mxu0 %v5314_v38  ;;  %4923 = vmatprep.mubr.msk.f32.mxu0 %vm5703_vm2, %v5704_v27  ;;  %v4512_v38 = vld [vmem:[%s5911_s3 + $0x58] sm:$0xff] }
 0x188   : > { %5316 = vmatprep.subr.bf16.mxu0 %v5702_v13  ;;  %4928 = vmatprep.mubr.msk.f32.mxu1 %vm5703_vm2, %v5704_v27  ;;  %v5329_v40 = vpack.c.bf16 %v4512_v38, %v4511_v37 }
 0x18b   : > { %5318 = vmatpush3.bf16.msra.mxu0 %v5317_v42  ;;  %v4526_v42 = vld [vmem:[%s5931_s29 + $0x38] sm:$0xff] }
 0x18c   : > { %5319 = vmatprep.subr.bf16.mxu0 %v5702_v13  ;;  %v5341_v43 = vpack.c.bf16 %v4526_v42, %v4525_v41  ;;  %v4539_v41 = vld [vmem:[%s5951_s18 + $0x28] sm:$0xff]  ;;  %v4542_v42 = vld [vmem:[%s5911_s3 + $0x60] sm:$0xff] }
 0x18f   : > { %5321 = vmatpush3.bf16.msra.mxu0 %v5320_v45  ;;  %v4528_v45 = vld [vmem:[%s5931_s29 + $0x48] sm:$0xff] }
 0x190   : > { %5331 = vmatprep.subr.bf16.mxu0 %v5702_v13  ;;  %v5344_v46 = vpack.c.bf16 %v4528_v45, %v4527_v44  ;;  %v4544_v45 = vld [vmem:[%s5911_s3 + $0x70] sm:$0xff] }
 0x192   : > { %4924 = vmatmul.mubr.msk.f32.vlgmr.msra.gmra.mrb[2].mxu0 %vm916_vm1, %v6011_v39 }
 0x193   : > { %5333 = vmatpush3.bf16.msra.mxu0 %v5332_v48  ;;  %4963 = vmatprep.mubr.msk.f32.mxu0 %vm5703_vm2, %v5704_v27  ;;  %v4530_v48 = vld [vmem:[%s5931_s29 + $0x58] sm:$0xff] }
 0x194   : > { %5334 = vmatprep.subr.bf16.mxu0 %v5702_v13  ;;  %v5347_v49 = vpack.c.bf16 %v4530_v48, %v4529_v47 }
 0x197   : > { %5336 = vmatpush3.bf16.msra.mxu0 %v5335_v51  ;;  %v1371_v51 = vld [vmem:[%s5951_s18 + $0x8] sm:$0xff] }
 0x198   : > { %5337 = vmatprep.subr.bf16.mxu0 %v5702_v13  ;;  %v5353_v52 = vpack.c.bf16 %v1371_v51, %v1370_v50  ;;  %v4546_v50 = vld [vmem:[%s5911_s3 + $0x80] sm:$0xff]  ;;  %v4547_v51 = vld [vmem:[%s5911_s3 + $0x88] sm:$0xff] }
 0x19b   : > { %5339 = vmatpush3.bf16.msra.mxu0 %v5338_v54  ;;  %v4551_v54 = vld [vmem:[%s5916_s28 + $0x60] sm:$0xff] }
 0x19c   : > { %4981 = vmatprep.subr.mxu0 %v5704_v27 }
 0x19e   : > { %4964 = vmatmul.mubr.msk.f32.vlgmr.msra.gmra.mrb[4].mxu0 %vm916_vm1, %v6011_v39 }
 0x19f   : > { %4983 = vmatprep.mubr.msk.f32.mxu0 %vm5703_vm2, %v5704_v27 }
 0x259   : > { %v1028_v57 = vpop.f32.mrb[0].mxu0  ;;  %v1114_v58 = vpop.f32.mrb[0].mxu1 }
 0x25a   : > { %v1029_v59 = vadd.f32 %v4498_v55, %v1028_v57  ;;  %v1115_v60 = vadd.f32 %v4500_v56, %v1114_v58  ;;  %v4895_v61 = vpop.f32.mrb[1].mxu0  ;;  %v4910_v62 = vpop.f32.mrb[1].mxu1  ;;  %v4552_v55 = vld [vmem:[%s5916_s28 + $0x68] sm:$0xff]  ;;  %v4553_v57 = vld [vmem:[%s5916_s28 + $0x70] sm:$0xff]  ;;  %v4554_v58 = vld [vmem:[%s5916_s28 + $0x78] sm:$0xff] }
 0x25b   : > { %v5365_v56 = vpack.c.bf16 %v4552_v55, %v4551_v54  ;;  %v5368_v61 = vpack.c.bf16 %v4554_v58, %v4553_v57  ;;  %v4555_v62 = vld [vmem:[%s5916_s28 + $0x80] sm:$0xff]  ;;  %v4561_v54 = vld [vmem:[%s5931_s29 + $0x68] sm:$0xff]  ;;  %v4563_v57 = vld [vmem:[%s5931_s29 + $0x78] sm:$0xff] }
 0x25c   : > { %vm1118_vm3 = vcmp.ge.f32.partialorder %v1115_v60, 0.0  ;;  %v1119_v63 = vmul.f32 0.01, %v1115_v60  ;;  %v1033_v0 = vmul.f32 0.01, %v1029_v59  ;;  %vm1032_vm5 = vcmp.ge.f32.partialorder %v1029_v59, 0.0 }
 0x25e   : > { %v1120_v1 = vsel %vm1118_vm3, %v1115_v60, %v1119_v63  ;;  %v1034_v2 = vsel %vm1032_vm5, %v1029_v59, %v1033_v0  ;;  %v4556_v63 = vld [vmem:[%s5916_s28 + $0x88] sm:$0xff] }
 0x25f   : > { %4927 = vmatpush3.xpose.msk.msra.mxu1 %vm1207_vm4, %v1120_v1  ;;  %v5371_v0 = vpack.c.bf16 %v4556_v63, %v4555_v62  ;;  %v4514_v1 = vld [vmem:[%s5921_s30 + $0x1] ss:$0 sm:$0xff]  ;;  %v4576_v62 = vld [vmem:[%s5911_s3 + $0x90] sm:$0xff]  ;;  %v4577_v63 = vld [vmem:[%s5911_s3 + $0x98] sm:$0xff] }
 0x260   : > { %4931 = vmatprep.subr.mxu1 %v5704_v27 }
 0x262   : > { %4929 = vmatmul.mubr.msk.f32.vlgmr.msra.gmra.mrb[2].mxu1 %vm1207_vm4, %v1034_v2 }
 0x263   : > { %4933 = vmatprep.mubr.msk.f32.mxu1 %vm5703_vm2, %v5704_v27 }
 0x265   : > { %v1200_v4 = vpop.f32.mrb[2].mxu0 }
 0x266   : > { %v1201_v5 = vadd.f32 %v4502_v3, %v1200_v4  ;;  %v4925_v6 = vpop.f32.mrb[3].mxu0 }
 0x268   : > { %vm1204_vm6 = vcmp.ge.f32.partialorder %v1201_v5, 0.0  ;;  %v1205_v7 = vmul.f32 0.01, %v1201_v5 }
 0x26a   : > { %v1206_v8 = vsel %vm1204_vm6, %v1201_v5, %v1205_v7  ;;  %v4532_v7 = vld [vmem:[%s5936_s23 + $0x1] ss:$0 sm:$0xff] }
 0x26b   : > { %4932 = vmatpush3.msra.mxu1 %v1206_v8 }
 0x26c   : > { %5322 = vmatprep.subr.bf16.mxu1 %v5702_v13 }
 0x271   : > { %v1542_v10 = vpop.f32.mrb[4].mxu0 }
 0x272   : > { %v1543_v11 = vadd.f32 %v4523_v9, %v1542_v10  ;;  %v4965_v12 = vpop.f32.mrb[5].mxu0 }
 0x274   : > { %vm1546_vm7 = vcmp.ge.f32.partialorder %v1543_v11, 0.0  ;;  %v1547_v14 = vmul.f32 0.01, %v1543_v11 }
 0x276   : > { %v1548_v15 = vsel %vm1546_vm7, %v1543_v11, %v1547_v14 }
 0x277   : > { %4982 = vmatpush3.xpose.msk.msra.mxu0 %vm1207_vm4, %v1548_v15 }
 0x278   : > { %4986 = vmatprep.subr.mxu0 %v5704_v27 }
 0x335   : > { %v1280_v16 = vpop.f32.mrb[2].mxu1 }
 0x336   : > { %v1284_v18 = vmul.f32 0.35355338, %v1280_v16  ;;  %v4930_v19 = vpop.f32.mrb[3].mxu1  ;;  %v4558_v16 = vld [vmem:[%s5926_s17 + $0x2] ss:$0 sm:$0xff] }
 0x338   : > { %v1285_v20 = vadd.f32 %v1284_v18, %v6060_v17 }
 0x33a   : > { %v1286_v21 = vsel %vm1207_vm4, %v1285_v20, -inf }
 0x33b   : > { %1287 = vmax.xlane.f32.xlu1 %v1286_v21 }
 0x3c8   : > { %v1288_v22 = vpop.xlane.xlu1 %1287 }
 0x3c9   : > { %v1289_v23 = vsub.f32 %v1285_v20, %v1288_v22 }
 0x3cb   : > { %v1290_v24 = vmul.f32 1.442695, %v1289_v23 }
 0x3cd   : > { %5573 = vpow2.f32 %v1290_v24 }
 0x3d7   : > { %v5574_v25 = vpop.eup %5573 }
 0x3d8   : > { %v1292_v26 = vsel %vm1207_vm4, %v5574_v25, 0.0 }
 0x3d9   : > { %1293 = vadd.xlane.f32.xlu1 %v1292_v26 }
 0x466   : > { %v1294_v28 = vpop.xlane.xlu1 %1293 }
 0x467   : > { %5575 = vrcp.f32 %v1294_v28 }
 0x471   : > { %v5576_v31 = vpop.eup %5575 }
 0x472   : > { %v1296_v33 = vmul.f32 %v5576_v31, %v5574_v25 }
 0x474   : > { %4934 = vmatmul.mubr.msk.f32.vlgmr.msra.gmra.mrb[4].mxu1 %vm1207_vm4, %v1296_v33 }
 0x475   : > { %5324 = vmatpush3.bf16.msra.mxu1 %v5323_v32  ;;  %4948 = vmatprep.mubr.msk.f32.mxu1 %vm5703_vm2, %v5704_v27 }
 0x476   : > { %5325 = vmatprep.subr.bf16.mxu1 %v5702_v13 }
 0x479   : > { %5327 = vmatpush3.bf16.msra.mxu1 %v5326_v36  ;;  %v4538_v36 = vld [vmem:[%s5951_s18 + $0x20] sm:$0xff] }
 0x47a   : > { %5328 = vmatprep.subr.bf16.mxu1 %v5702_v13  ;;  %v5350_v38 = vpack.c.bf16 %v4538_v36, %v4537_v35  ;;  %v4632_v35 = vld [vmem:[%s5931_s29 + $0xe0] sm:$0xff]  ;;  %v4633_v36 = vld [vmem:[%s5931_s29 + $0xe8] sm:$0xff] }
 0x47d   : > { %5330 = vmatpush3.bf16.msra.mxu1 %v5329_v40 }
 0x47e   : > { %5340 = vmatprep.subr.bf16.mxu1 %v5702_v13 }
 0x480   : > { %4949 = vmatmul.mubr.msk.f32.vlgmr.msra.gmra.mrb[6].mxu1 %vm916_vm1, %v6011_v39 }
 0x481   : > { %5342 = vmatpush3.bf16.msra.mxu1 %v5341_v43  ;;  %4978 = vmatprep.mubr.msk.f32.mxu1 %vm5703_vm2, %v5704_v27  ;;  %v4543_v43 = vld [vmem:[%s5911_s3 + $0x68] sm:$0xff] }
 0x482   : > { %5343 = vmatprep.subr.bf16.mxu1 %v5702_v13  ;;  %v5356_v44 = vpack.c.bf16 %v4543_v43, %v4542_v42  ;;  %v4549_v42 = vld [vmem:[%s5921_s30 + $0x2] ss:$0 sm:$0xff] }
 0x485   : > { %5345 = vmatpush3.bf16.msra.mxu1 %v5344_v46  ;;  %v4545_v46 = vld [vmem:[%s5911_s3 + $0x78] sm:$0xff] }
 0x486   : > { %5346 = vmatprep.subr.bf16.mxu1 %v5702_v13 }
 0x489   : > { %5348 = vmatpush3.bf16.msra.mxu1 %v5347_v49  ;;  %v5359_v49 = vpack.c.bf16 %v4545_v46, %v4544_v45 }
 0x48a   : > { %5352 = vmatprep.subr.bf16.mxu1 %v5702_v13 }
 0x48c   : > { %4979 = vmatmul.mubr.msk.f32.vlgmr.msra.gmra.mrb[8].mxu1 %vm916_vm1, %v6011_v39 }
 0x48d   : > { %5354 = vmatpush3.bf16.msra.mxu1 %v5353_v52  ;;  %5006 = vmatprep.mubr.msk.f32.mxu1 %vm5703_vm2, %v5704_v27  ;;  %v5362_v52 = vpack.c.bf16 %v4547_v51, %v4546_v50 }
 0x48e   : > { %5004 = vmatprep.subr.mxu1 %v5704_v27 }
 0x491   : > { %5005 = vmatpush3.msra.mxu1 %v1372_v53  ;;  %v4560_v53 = vld [vmem:[%s5931_s29 + $0x60] sm:$0xff] }
 0x492   : > { %5364 = vmatprep.subr.bf16.mxu1 %v5702_v13  ;;  %v5374_v55 = vpack.c.bf16 %v4561_v54, %v4560_v53 }
 0x547   : > { %v1366_v59 = vpop.f32.mrb[4].mxu1 }
 0x548   : > { %v4935_v60 = vpop.f32.mrb[5].mxu1  ;;  %5007 = vmatmul.mubr.msk.f32.vlgmr.msra.gmra.mrb[10].mxu1 %vm1803_vm8, %v1366_v59  ;;  %v4564_v59 = vld [vmem:[%s5931_s29 + $0x80] sm:$0xff] }
 0x549   : > { %5366 = vmatpush3.bf16.msra.mxu1 %v5365_v56  ;;  %5036 = vmatprep.mubr.msk.f32.mxu1 %vm5703_vm2, %v5704_v27  ;;  %v4562_v56 = vld [vmem:[%s5931_s29 + $0x70] sm:$0xff]  ;;  %v4565_v60 = vld [vmem:[%s5931_s29 + $0x88] sm:$0xff] }
 0x54a   : > { %5367 = vmatprep.subr.bf16.mxu1 %v5702_v13  ;;  %v5377_v58 = vpack.c.bf16 %v4563_v57, %v4562_v56 }
 0x54d   : > { %5369 = vmatpush3.bf16.msra.mxu1 %v5368_v61  ;;  %v5380_v61 = vpack.c.bf16 %v4565_v60, %v4564_v59 }
 0x54e   : > { %5370 = vmatprep.subr.bf16.mxu1 %v5702_v13 }
 0x551   : > { %5372 = vmatpush3.bf16.msra.mxu1 %v5371_v0  ;;  %v5386_v0 = vpack.c.bf16 %v4577_v63, %v4576_v62 }
 0x552   : > { %5054 = vmatprep.subr.mxu1 %v5704_v27 }
 0x553   : > { %v1454_v2 = vpop.f32.mrb[6].mxu1 }
 0x554   : > { %v1455_v3 = vadd.f32 %v4514_v1, %v1454_v2  ;;  %v4950_v4 = vpop.f32.mrb[7].mxu1  ;;  %5037 = vmatmul.mubr.msk.f32.vlgmr.msra.gmra.mrb[12].mxu1 %vm916_vm1, %v6011_v39  ;;  %v4578_v1 = vld [vmem:[%s5911_s3 + $0xa0] sm:$0xff]  ;;  %v4579_v2 = vld [vmem:[%s5911_s3 + $0xa8] sm:$0xff] }
 0x555   : > { %5056 = vmatprep.mubr.msk.f32.mxu1 %vm5703_vm2, %v5704_v27  ;;  %v4580_v4 = vld [vmem:[%s5911_s3 + $0xb0] sm:$0xff] }
 0x556   : > { %vm1458_vm9 = vcmp.ge.f32.partialorder %v1455_v3, 0.0  ;;  %v1459_v5 = vmul.f32 0.01, %v1455_v3 }
 0x558   : > { %v1460_v6 = vsel %vm1458_vm9, %v1455_v3, %v1459_v5  ;;  %v5389_v3 = vpack.c.bf16 %v4579_v2, %v4578_v1  ;;  %v4581_v5 = vld [vmem:[%s5911_s3 + $0xb8] sm:$0xff] }
 0x559   : > { %4984 = vmatmul.mubr.msk.f32.vlgmr.msra.gmra.mrb[6].mxu0 %vm1207_vm4, %v1460_v6  ;;  %v5392_v6 = vpack.c.bf16 %v4581_v5, %v4580_v4 }
 0x55a   : > { %4988 = vmatprep.mubr.msk.f32.mxu0 %vm5703_vm2, %v5704_v27 }
 0x55f   : > { %v1630_v8 = vpop.f32.mrb[8].mxu1 }
 0x560   : > { %v1631_v9 = vadd.f32 %v4532_v7, %v1630_v8  ;;  %v4980_v10 = vpop.f32.mrb[9].mxu1  ;;  %v4594_v7 = vld [vmem:[%s5931_s29 + $0x90] sm:$0xff]  ;;  %v4595_v8 = vld [vmem:[%s5931_s29 + $0x98] sm:$0xff] }
 0x561   : > { %v4596_v10 = vld [vmem:[%s5931_s29 + $0xa0] sm:$0xff] }
 0x562   : > { %vm1634_vm10 = vcmp.ge.f32.partialorder %v1631_v9, 0.0  ;;  %v1635_v11 = vmul.f32 0.01, %v1631_v9 }
 0x564   : > { %v1636_v12 = vsel %vm1634_vm10, %v1631_v9, %v1635_v11  ;;  %v5404_v9 = vpack.c.bf16 %v4595_v8, %v4594_v7  ;;  %v4597_v11 = vld [vmem:[%s5931_s29 + $0xa8] sm:$0xff]  ;;  %v4572_v8 = vld [vmem:[%s5951_s18 + $0x30] sm:$0xff] }
 0x565   : > { %4987 = vmatpush3.msra.mxu0 %v1636_v12  ;;  %v5407_v12 = vpack.c.bf16 %v4597_v11, %v4596_v10 }
 0x566   : > { %5349 = vmatprep.subr.bf16.mxu0 %v5702_v13 }
 0x61b   : > { %v6121_v14 = vpop.f32.mrb[10].mxu1 }
 0x61c   : > { %v5008_v15 = vpop.f32.mrb[11].mxu1 }
 0x61d   : > { %v4598_v15 = vld [vmem:[%s5931_s29 + $0xb0] sm:$0xff] }
 0x627   : > { %v2119_v18 = vpop.f32.mrb[12].mxu1 }
 0x628   : > { %v2120_v19 = vadd.f32 %v4558_v16, %v2119_v18  ;;  %v5038_v20 = vpop.f32.mrb[13].mxu1  ;;  %v4599_v16 = vld [vmem:[%s5931_s29 + $0xb8] sm:$0xff] }
 0x629   : > { %v5410_v18 = vpack.c.bf16 %v4599_v16, %v4598_v15  ;;  %v4611_v20 = vld [vmem:[%s5911_s3 + $0xc8] sm:$0xff]  ;;  %v4574_v15 = vld [vmem:[%s5951_s18 + $0x40] sm:$0xff]  ;;  %v4585_v16 = vld [vmem:[%s5916_s28 + $0x90] sm:$0xff] }
 0x62a   : > { %vm2123_vm11 = vcmp.ge.f32.partialorder %v2120_v19, 0.0  ;;  %v2124_v21 = vmul.f32 0.01, %v2120_v19 }
 0x62c   : > { %v2125_v22 = vsel %vm2123_vm11, %v2120_v19, %v2124_v21  ;;  %v1709_v23 = vpop.f32.mrb[6].mxu0  ;;  %v4610_v19 = vld [vmem:[%s5911_s3 + $0xc0] sm:$0xff] }
 0x62d   : > { %v1713_v24 = vmul.f32 0.35355338, %v1709_v23  ;;  %v4985_v25 = vpop.f32.mrb[7].mxu0  ;;  %5055 = vmatpush3.xpose.msk.msra.mxu1 %vm1207_vm4, %v2125_v22  ;;  %v5416_v21 = vpack.c.bf16 %v4611_v20, %v4610_v19  ;;  %v4612_v22 = vld [vmem:[%s5911_s3 + $0xd0] sm:$0xff]  ;;  %v4613_v23 = vld [vmem:[%s5911_s3 + $0xd8] sm:$0xff]  ;;  %v4587_v20 = vld [vmem:[%s5916_s28 + $0xa0] sm:$0xff] }
 0x62e   : > { %5059 = vmatprep.subr.mxu1 %v5704_v27  ;;  %v4614_v25 = vld [vmem:[%s5911_s3 + $0xe0] sm:$0xff] }
 0x62f   : > { %v1714_v26 = vadd.f32 %v1713_v24, %v6060_v17  ;;  %v5419_v24 = vpack.c.bf16 %v4613_v23, %v4612_v22 }
 0x631   : > { %v1715_v28 = vsel %vm1207_vm4, %v1714_v26, -inf }
 0x632   : > { %1716 = vmax.xlane.f32.xlu0 %v1715_v28 }
 0x6bf   : > { %v1717_v29 = vpop.xlane.xlu0 %1716 }
 0x6c0   : > { %v1718_v30 = vsub.f32 %v1714_v26, %v1717_v29  ;;  %v4615_v26 = vld [vmem:[%s5911_s3 + $0xe8] sm:$0xff]  ;;  %v4628_v29 = vld [vmem:[%s5931_s29 + $0xc0] sm:$0xff] }
 0x6c1   : > { %v5422_v28 = vpack.c.bf16 %v4615_v26, %v4614_v25  ;;  %v4589_v25 = vld [vmem:[%s5916_s28 + $0xb0] sm:$0xff]  ;;  %v4590_v26 = vld [vmem:[%s5916_s28 + $0xb8] sm:$0xff] }
 0x6c2   : > { %v1719_v31 = vmul.f32 1.442695, %v1718_v30  ;;  %v4629_v30 = vld [vmem:[%s5931_s29 + $0xc8] sm:$0xff] }
 0x6c4   : > { %5577 = vpow2.f32 %v1719_v31  ;;  %v5434_v31 = vpack.c.bf16 %v4629_v30, %v4628_v29 }
 0x6ce   : > { %v5578_v32 = vpop.eup %5577 }
 0x6cf   : > { %v1721_v33 = vsel %vm1207_vm4, %v5578_v32, 0.0 }
 0x6d0   : > { %1722 = vadd.xlane.f32.xlu1 %v1721_v33  ;;  %v4631_v33 = vld [vmem:[%s5931_s29 + $0xd8] sm:$0xff] }
 0x75d   : > { %v1723_v34 = vpop.xlane.xlu1 %1722 }
 0x75e   : > { %5579 = vrcp.f32 %v1723_v34 }
 0x768   : > { %v5580_v37 = vpop.eup %5579 }
 0x769   : > { %v1725_v40 = vmul.f32 %v5580_v37, %v5578_v32  ;;  %v4630_v32 = vld [vmem:[%s5931_s29 + $0xd0] sm:$0xff]  ;;  %v5440_v37 = vpack.c.bf16 %v4633_v36, %v4632_v35 }
 0x76a   : > { %v5437_v34 = vpack.c.bf16 %v4631_v33, %v4630_v32  ;;  %v4583_v32 = vld [vmem:[%s5921_s30 + $0x3] ss:$0 sm:$0xff] }
 0x76b   : > { %4989 = vmatmul.mubr.msk.f32.vlgmr.msra.gmra.mrb[8].mxu0 %vm1207_vm4, %v1725_v40  ;;  %v4601_v33 = vld [vmem:[%s5936_s23 + $0x3] ss:$0 sm:$0xff] }
 0x76c   : > { %5351 = vmatpush3.bf16.msra.mxu0 %v5350_v38  ;;  %4997 = vmatprep.mubr.msk.f32.mxu0 %vm5703_vm2, %v5704_v27 }
 0x76d   : > { %4995 = vmatprep.subr.mxu0 %v5704_v27 }
 0x770   : > { %4996 = vmatpush3.msra.mxu0 %v4539_v41 }
 0x771   : > { %5355 = vmatprep.subr.bf16.mxu0 %v5702_v13 }
 0x83e   : > { %v1795_v47 = vpop.f32.mrb[8].mxu0 }
 0x83f   : > { %v4990_v48 = vpop.f32.mrb[9].mxu0  ;;  %4998 = vmatmul.mubr.msk.f32.vlgmr.msra.gmra.mrb[10].mxu0 %vm1803_vm8, %v1795_v47 }
 0x840   : > { %5357 = vmatpush3.bf16.msra.mxu0 %v5356_v44  ;;  %5021 = vmatprep.mubr.msk.f32.mxu0 %vm5703_vm2, %v5704_v27  ;;  %v4567_v48 = vld [vmem:[%s5936_s23 + $0x2] ss:$0 sm:$0xff] }
 0x841   : > { %5358 = vmatprep.subr.bf16.mxu0 %v5702_v13 }
 0x844   : > { %5360 = vmatpush3.bf16.msra.mxu0 %v5359_v49 }
 0x845   : > { %5361 = vmatprep.subr.bf16.mxu0 %v5702_v13 }
 0x848   : > { %5363 = vmatpush3.bf16.msra.mxu0 %v5362_v52 }
 0x849   : > { %5373 = vmatprep.subr.bf16.mxu0 %v5702_v13 }
 0x84b   : > { %5022 = vmatmul.mubr.msk.f32.vlgmr.msra.gmra.mrb[12].mxu0 %vm916_vm1, %v6011_v39 }
 0x84c   : > { %5375 = vmatpush3.bf16.msra.mxu0 %v5374_v55  ;;  %5051 = vmatprep.mubr.msk.f32.mxu0 %vm5703_vm2, %v5704_v27 }
 0x84d   : > { %5376 = vmatprep.subr.bf16.mxu0 %v5702_v13 }
 0x850   : > { %5378 = vmatpush3.bf16.msra.mxu0 %v5377_v58 }
 0x851   : > { %5379 = vmatprep.subr.bf16.mxu0 %v5702_v13 }
 0x854   : > { %5381 = vmatpush3.bf16.msra.mxu0 %v5380_v61 }
 0x855   : > { %5385 = vmatprep.subr.bf16.mxu0 %v5702_v13 }
 0x857   : > { %5052 = vmatmul.mubr.msk.f32.vlgmr.msra.gmra.mrb[14].mxu0 %vm916_vm1, %v6011_v39 }
 0x858   : > { %5387 = vmatpush3.bf16.msra.mxu0 %v5386_v0  ;;  %5085 = vmatprep.mubr.msk.f32.mxu0 %vm5703_vm2, %v5704_v27 }
 0x859   : > { %5388 = vmatprep.subr.bf16.mxu0 %v5702_v13 }
 0x85c   : > { %5390 = vmatpush3.bf16.msra.mxu0 %v5389_v3 }
 0x85d   : > { %5391 = vmatprep.subr.bf16.mxu0 %v5702_v13 }
 0x860   : > { %5393 = vmatpush3.bf16.msra.mxu0 %v5392_v6 }
 0x861   : > { %5403 = vmatprep.subr.bf16.mxu0 %v5702_v13 }
 0x863   : > { %5086 = vmatmul.mubr.msk.f32.vlgmr.msra.gmra.mrb[16].mxu0 %vm916_vm1, %v6011_v39 }
 0x864   : > { %5405 = vmatpush3.bf16.msra.mxu0 %v5404_v9  ;;  %5115 = vmatprep.mubr.msk.f32.mxu0 %vm5703_vm2, %v5704_v27  ;;  %v4573_v9 = vld [vmem:[%s5951_s18 + $0x38] sm:$0xff] }
 0x865   : > { %5406 = vmatprep.subr.bf16.mxu0 %v5702_v13  ;;  %v5383_v11 = vpack.c.bf16 %v4573_v9, %v4572_v8  ;;  %v4623_v9 = vld [vmem:[%s5916_s28 + $0xe0] sm:$0xff] }
 0x868   : > { %5408 = vmatpush3.bf16.msra.mxu0 %v5407_v12 }
 0x869   : > { %5409 = vmatprep.subr.bf16.mxu0 %v5702_v13 }
 0x86c   : > { %5411 = vmatpush3.bf16.msra.mxu0 %v5410_v18  ;;  %v4586_v18 = vld [vmem:[%s5916_s28 + $0x98] sm:$0xff] }
 0x86d   : > { %5415 = vmatprep.subr.bf16.mxu0 %v5702_v13  ;;  %v5395_v19 = vpack.c.bf16 %v4586_v18, %v4585_v16  ;;  %v4617_v18 = vld [vmem:[%s5921_s30 + $0x4] ss:$0 sm:$0xff] }
 0x86f   : > { %5116 = vmatmul.mubr.msk.f32.vlgmr.msra.gmra.mrb[18].mxu0 %vm916_vm1, %v6011_v39 }
 0x870   : > { %5417 = vmatpush3.bf16.msra.mxu0 %v5416_v21  ;;  %5149 = vmatprep.mubr.msk.f32.mxu0 %vm5703_vm2, %v5704_v27  ;;  %v4588_v21 = vld [vmem:[%s5916_s28 + $0xa8] sm:$0xff] }
 0x871   : > { %5418 = vmatprep.subr.bf16.mxu0 %v5702_v13 }
 0x874   : > { %5420 = vmatpush3.bf16.msra.mxu0 %v5419_v24  ;;  %v5398_v24 = vpack.c.bf16 %v4588_v21, %v4587_v20  ;;  %v4626_v20 = vld [vmem:[%s5926_s17 + $0x4] ss:$0 sm:$0xff] }
 0x875   : > { %5421 = vmatprep.subr.bf16.mxu0 %v5702_v13 }
 0x878   : > { %5423 = vmatpush3.bf16.msra.mxu0 %v5422_v28  ;;  %v5401_v28 = vpack.c.bf16 %v4590_v26, %v4589_v25 }
 0x879   : > { %5433 = vmatprep.subr.bf16.mxu0 %v5702_v13 }
 0x87b   : > { %5150 = vmatmul.mubr.msk.f32.vlgmr.msra.gmra.mrb[20].mxu0 %vm916_vm1, %v6011_v39 }
 0x87c   : > { %5435 = vmatpush3.bf16.msra.mxu0 %v5434_v31  ;;  %5179 = vmatprep.mubr.msk.f32.mxu0 %vm5703_vm2, %v5704_v27 }
 0x87d   : > { %5436 = vmatprep.subr.bf16.mxu0 %v5702_v13 }
 0x880   : > { %5438 = vmatpush3.bf16.msra.mxu0 %v5437_v34  ;;  %v4592_v34 = vld [vmem:[%s5926_s17 + $0x3] ss:$0 sm:$0xff] }
 0x881   : > { %5439 = vmatprep.subr.bf16.mxu0 %v5702_v13 }
 0x884   : > { %5441 = vmatpush3.bf16.msra.mxu0 %v5440_v37 }
 0x885   : > { %5442 = vmatprep.subr.bf16.mxu0 %v5702_v13 }
 0x887   : > { %5180 = vmatmul.mubr.msk.f32.vlgmr.msra.gmra.mrb[22].mxu0 %vm916_vm1, %v6011_v39 }
 0x888   : > { %5198 = vmatprep.mubr.msk.f32.mxu0 %vm5703_vm2, %v5704_v27 }
 0x912   : > { %v1873_v38 = vpop.f32.mrb[10].mxu0 }
 0x913   : > { %v6219_v40 = vadd.f32 %v6121_v14, %v1873_v38  ;;  %v4999_v41 = vpop.f32.mrb[11].mxu0 }
 0x91e   : > { %v2031_v43 = vpop.f32.mrb[12].mxu0 }
 0x91f   : > { %v2032_v44 = vadd.f32 %v4549_v42, %v2031_v43  ;;  %v5023_v45 = vpop.f32.mrb[13].mxu0 }
 0x921   : > { %vm2035_vm12 = vcmp.ge.f32.partialorder %v2032_v44, 0.0  ;;  %v2036_v46 = vmul.f32 0.01, %v2032_v44 }
 0x923   : > { %v2037_v47 = vsel %vm2035_vm12, %v2032_v44, %v2036_v46 }
 0x924   : > { %5057 = vmatmul.mubr.msk.f32.vlgmr.msra.gmra.mrb[14].mxu1 %vm1207_vm4, %v2037_v47 }
 0x925   : > { %5061 = vmatprep.mubr.msk.f32.mxu1 %vm5703_vm2, %v5704_v27 }
 0x92a   : > { %v2207_v49 = vpop.f32.mrb[14].mxu0 }
 0x92b   : > { %v2208_v50 = vadd.f32 %v4567_v48, %v2207_v49  ;;  %v5053_v51 = vpop.f32.mrb[15].mxu0 }
 0x92d   : > { %vm2211_vm13 = vcmp.ge.f32.partialorder %v2208_v50, 0.0  ;;  %v2212_v14 = vmul.f32 0.01, %v2208_v50 }
 0x92f   : > { %v2213_v52 = vsel %vm2211_vm13, %v2208_v50, %v2212_v14 }
 0x930   : > { %5060 = vmatpush3.msra.mxu1 %v2213_v52 }
 0x931   : > { %5382 = vmatprep.subr.bf16.mxu1 %v5702_v13 }
 0x936   : > { %v2535_v53 = vpop.f32.mrb[16].mxu0 }
 0x937   : > { %v5087_v54 = vpop.f32.mrb[17].mxu0  ;;  %v2536_v35 = vadd.f32 %v4583_v32, %v2535_v53 }
 0x939   : > { %v2540_v43 = vmul.f32 0.01, %v2536_v35  ;;  %vm2539_vm15 = vcmp.ge.f32.partialorder %v2536_v35, 0.0 }
 0x942   : > { %v2711_v55 = vpop.f32.mrb[18].mxu0 }
 0x943   : > { %v5117_v56 = vpop.f32.mrb[19].mxu0  ;;  %v2712_v37 = vadd.f32 %v4601_v33, %v2711_v55 }
 0x945   : > { %v2716_v44 = vmul.f32 0.01, %v2712_v37  ;;  %vm2715_vm0 = vcmp.ge.f32.partialorder %v2712_v37, 0.0 }
 0x947   : > { %v2717_v46 = vsel %vm2715_vm0, %v2712_v37, %v2716_v44  ;;  %v4641_v44 = vld [vmem:[%s5951_s18 + $0x68] sm:$0xff] }
 0x94e   : > { %v6227_v57 = vpop.f32.mrb[20].mxu0 }
 0x94f   : > { %v5151_v58 = vpop.f32.mrb[21].mxu0  ;;  %v3040_v21 = vadd.f32 %v4617_v18, %v6227_v57 }
 0x950   : > { %v4606_v58 = vld [vmem:[%s5951_s18 + $0x48] sm:$0xff] }
 0x951   : > { %vm3043_vm5 = vcmp.ge.f32.partialorder %v3040_v21, 0.0 }
 0x95a   : > { %v6229_v59 = vpop.f32.mrb[22].mxu0 }
 0x95b   : > { %v5181_v60 = vpop.f32.mrb[23].mxu0 }
 0x95c   : > { %v4607_v60 = vld [vmem:[%s5951_s18 + $0x50] sm:$0xff] }
 0x9f7   : > { %v2286_v61 = vpop.f32.mrb[14].mxu1 }
 0x9f8   : > { %v2290_v62 = vmul.f32 0.35355338, %v2286_v61  ;;  %v5058_v63 = vpop.f32.mrb[15].mxu1 }
 0x9fa   : > { %v2291_v0 = vadd.f32 %v2290_v62, %v6060_v17  ;;  %v5413_v62 = vpack.c.bf16 %v4607_v60, %v4606_v58  ;;  %v4663_v58 = vld [vmem:[%s5931_s29 + $0xf8] sm:$0xff] }
 0x9fc   : > { %v2292_v1 = vsel %vm1207_vm4, %v2291_v0, -inf }
 0x9fd   : > { %2293 = vmax.xlane.f32.xlu0 %v2292_v1  ;;  %v4619_v1 = vld [vmem:[%s5916_s28 + $0xc0] sm:$0xff] }
 0xa8a   : > { %v2294_v2 = vpop.xlane.xlu0 %2293 }
 0xa8b   : > { %v2295_v3 = vsub.f32 %v2291_v0, %v2294_v2  ;;  %v4608_v0 = vld [vmem:[%s5951_s18 + $0x58] sm:$0xff]  ;;  %v4620_v2 = vld [vmem:[%s5916_s28 + $0xc8] sm:$0xff] }
 0xa8d   : > { %v2296_v4 = vmul.f32 1.442695, %v2295_v3  ;;  %v5425_v3 = vpack.c.bf16 %v4620_v2, %v4619_v1  ;;  %v4667_v1 = vld [vmem:[%s5931_s29 + $0x118] sm:$0xff] }
 0xa8f   : > { %5581 = vpow2.f32 %v2296_v4  ;;  %v4621_v4 = vld [vmem:[%s5916_s28 + $0xd0] sm:$0xff] }
 0xa99   : > { %v5582_v5 = vpop.eup %5581 }
 0xa9a   : > { %v2298_v6 = vsel %vm1207_vm4, %v5582_v5, 0.0 }
 0xa9b   : > { %2299 = vadd.xlane.f32.xlu1 %v2298_v6 }
 0xb28   : > { %v2300_v7 = vpop.xlane.xlu1 %2299 }
 0xb29   : > { %5583 = vrcp.f32 %v2300_v7 }
 0xb33   : > { %v5584_v10 = vpop.eup %5583 }
 0xb34   : > { %v2302_v12 = vmul.f32 %v5584_v10, %v5582_v5  ;;  %v4622_v5 = vld [vmem:[%s5916_s28 + $0xd8] sm:$0xff]  ;;  %v4624_v10 = vld [vmem:[%s5916_s28 + $0xe8] sm:$0xff] }
 0xb35   : > { %v5428_v8 = vpack.c.bf16 %v4622_v5, %v4621_v4  ;;  %v4654_v4 = vld [vmem:[%s5916_s28 + $0xf8] sm:$0xff] }
 0xb36   : > { %5062 = vmatmul.mubr.msk.f32.vlgmr.msra.gmra.mrb[16].mxu1 %vm1207_vm4, %v2302_v12 }
 0xb37   : > { %5384 = vmatpush3.bf16.msra.mxu1 %v5383_v11  ;;  %5070 = vmatprep.mubr.msk.f32.mxu1 %vm5703_vm2, %v5704_v27  ;;  %v5431_v11 = vpack.c.bf16 %v4624_v10, %v4623_v9 }
 0xb38   : > { %5068 = vmatprep.subr.mxu1 %v5704_v27 }
 0xb3b   : > { %5069 = vmatpush3.msra.mxu1 %v4574_v15 }
 0xb3c   : > { %5394 = vmatprep.subr.bf16.mxu1 %v5702_v13 }
 0xc09   : > { %v2372_v22 = vpop.f32.mrb[16].mxu1 }
 0xc0a   : > { %v5063_v23 = vpop.f32.mrb[17].mxu1  ;;  %5071 = vmatmul.mubr.msk.f32.vlgmr.msra.gmra.mrb[18].mxu1 %vm1803_vm8, %v2372_v22 }
 0xc0b   : > { %5396 = vmatpush3.bf16.msra.mxu1 %v5395_v19  ;;  %5100 = vmatprep.mubr.msk.f32.mxu1 %vm5703_vm2, %v5704_v27  ;;  %v4635_v19 = vld [vmem:[%s5936_s23 + $0x4] ss:$0 sm:$0xff] }
 0xc0c   : > { %5397 = vmatprep.subr.bf16.mxu1 %v5702_v13  ;;  %v3216_v23 = vadd.f32 %v4635_v19, %v6229_v59 }
 0xc0e   : > { %vm3219_vm6 = vcmp.ge.f32.partialorder %v3216_v23, 0.0 }
 0xc0f   : > { %5399 = vmatpush3.bf16.msra.mxu1 %v5398_v24 }
 0xc10   : > { %5400 = vmatprep.subr.bf16.mxu1 %v5702_v13 }
 0xc13   : > { %5402 = vmatpush3.bf16.msra.mxu1 %v5401_v28  ;;  %v3044_v28 = vmul.f32 0.01, %v3040_v21 }
 0xc14   : > { %5118 = vmatprep.subr.mxu1 %v5704_v27 }
 0xc16   : > { %5101 = vmatmul.mubr.msk.f32.vlgmr.msra.gmra.mrb[20].mxu1 %vm916_vm1, %v6011_v39 }
 0xc17   : > { %5120 = vmatprep.mubr.msk.f32.mxu1 %vm5703_vm2, %v5704_v27 }
 0xcdd   : > { %v2449_v29 = vpop.f32.mrb[18].mxu1 }
 0xcde   : > { %v6259_v30 = vadd.f32 %v2449_v29, %v6219_v40  ;;  %v5072_v31 = vpop.f32.mrb[19].mxu1  ;;  %v2541_v40 = vsel %vm2539_vm15, %v2536_v35, %v2540_v43  ;;  %v3220_v29 = vmul.f32 0.01, %v3216_v23  ;;  %v4640_v43 = vld [vmem:[%s5951_s18 + $0x60] sm:$0xff] }
 0xce0   : > { %v3221_v57 = vsel %vm3219_vm6, %v3216_v23, %v3220_v29 }
 0xce9   : > { %v2623_v36 = vpop.f32.mrb[20].mxu1 }
 0xcea   : > { %v2624_v38 = vadd.f32 %v4592_v34, %v2623_v36  ;;  %v5102_v41 = vpop.f32.mrb[21].mxu1 }
 0xcec   : > { %vm2627_vm14 = vcmp.ge.f32.partialorder %v2624_v38, 0.0  ;;  %v2628_v42 = vmul.f32 0.01, %v2624_v38 }
 0xcee   : > { %v2629_v45 = vsel %vm2627_vm14, %v2624_v38, %v2628_v42 }
 0xcef   : > { %5119 = vmatpush3.xpose.msk.msra.mxu1 %vm1207_vm4, %v2629_v45  ;;  %v5443_v45 = vpack.c.bf16 %v4641_v44, %v4640_v43 }
 0xcf0   : > { %5123 = vmatprep.subr.mxu1 %v5704_v27 }
 0xcf1   : > { %5444 = vmatpush3.bf16.msra.mxu0 %v5443_v45 }
 0xcf2   : > { %5121 = vmatmul.mubr.msk.f32.vlgmr.msra.gmra.mrb[22].mxu1 %vm1207_vm4, %v2541_v40  ;;  %5196 = vmatprep.subr.mxu0 %v5704_v27 }
 0xcf3   : > { %5124 = vmatpush3.msra.mxu1 %v2717_v46  ;;  %5125 = vmatprep.mubr.msk.f32.mxu1 %vm5703_vm2, %v5704_v27  ;;  %v4644_v46 = vld [vmem:[%s5911_s3 + $0xf0] sm:$0xff] }
 0xcf4   : > { %5412 = vmatprep.subr.bf16.mxu1 %v5702_v13 }
 0xdc5   : > { %v2790_v47 = vpop.f32.mrb[22].mxu1 }
 0xdc6   : > { %v2794_v48 = vmul.f32 0.35355338, %v2790_v47  ;;  %v5122_v49 = vpop.f32.mrb[23].mxu1  ;;  %v4645_v47 = vld [vmem:[%s5911_s3 + $0xf8] sm:$0xff] }
 0xdc7   : > { %v5446_v49 = vpack.c.bf16 %v4645_v47, %v4644_v46 }
 0xdc8   : > { %v2795_v50 = vadd.f32 %v2794_v48, %v6060_v17 }
 0xdca   : > { %v2796_v51 = vsel %vm1207_vm4, %v2795_v50, -inf }
 0xdcb   : > { %2797 = vmax.xlane.f32.xlu0 %v2796_v51  ;;  %v4646_v51 = vld [vmem:[%s5911_s3 + $0x100] sm:$0xff] }
 0xe58   : > { %v2798_v14 = vpop.xlane.xlu0 %2797 }
 0xe59   : > { %v2799_v52 = vsub.f32 %v2795_v50, %v2798_v14  ;;  %v4647_v14 = vld [vmem:[%s5911_s3 + $0x108] sm:$0xff] }
 0xe5b   : > { %v2800_v53 = vmul.f32 1.442695, %v2799_v52  ;;  %v5449_v52 = vpack.c.bf16 %v4647_v14, %v4646_v51 }
 0xe5d   : > { %5585 = vpow2.f32 %v2800_v53  ;;  %v4648_v53 = vld [vmem:[%s5911_s3 + $0x110] sm:$0xff] }
 0xe67   : > { %v5586_v54 = vpop.eup %5585 }
 0xe68   : > { %v2802_v55 = vsel %vm1207_vm4, %v5586_v54, 0.0 }
 0xe69   : > { %2803 = vadd.xlane.f32.xlu1 %v2802_v55 }
 0xef6   : > { %v2804_v56 = vpop.xlane.xlu1 %2803 }
 0xef7   : > { %5587 = vrcp.f32 %v2804_v56  ;;  %v4662_v56 = vld [vmem:[%s5931_s29 + $0xf0] sm:$0xff] }
 0xef8   : > { %v5464_v60 = vpack.c.bf16 %v4663_v58, %v4662_v56 }
 0xf01   : > { %v5588_v61 = vpop.eup %5587 }
 0xf02   : > { %v2806_v63 = vmul.f32 %v5588_v61, %v5586_v54  ;;  %v4649_v54 = vld [vmem:[%s5911_s3 + $0x118] sm:$0xff]  ;;  %v4664_v61 = vld [vmem:[%s5931_s29 + $0x100] sm:$0xff] }
 0xf03   : > { %v5452_v55 = vpack.c.bf16 %v4649_v54, %v4648_v53  ;;  %v4676_v53 = vld [vmem:[%s5951_s18 + $0x88] sm:$0xff] }
 0xf04   : > { %5126 = vmatmul.mubr.msk.f32.vlgmr.msra.gmra.mrb[24].mxu1 %vm1207_vm4, %v2806_v63 }
 0xf05   : > { %5414 = vmatpush3.bf16.msra.mxu1 %v5413_v62  ;;  %5134 = vmatprep.mubr.msk.f32.mxu1 %vm5703_vm2, %v5704_v27  ;;  %v4665_v62 = vld [vmem:[%s5931_s29 + $0x108] sm:$0xff] }
 0xf06   : > { %5132 = vmatprep.subr.mxu1 %v5704_v27  ;;  %v5467_v63 = vpack.c.bf16 %v4665_v62, %v4664_v61 }
 0xf09   : > { %5133 = vmatpush3.msra.mxu1 %v4608_v0  ;;  %v4666_v0 = vld [vmem:[%s5931_s29 + $0x110] sm:$0xff]  ;;  %s6594_s29 = sld [smem:[#allocation29_spill]] }
 0xf0a   : > { %5424 = vmatprep.subr.bf16.mxu1 %v5702_v13  ;;  %v5470_v2 = vpack.c.bf16 %v4667_v1, %v4666_v0 }
 0xfd7   : > { %v2876_v6 = vpop.f32.mrb[24].mxu1 }
 0xfd8   : > { %v5127_v7 = vpop.f32.mrb[25].mxu1  ;;  %5135 = vmatmul.mubr.msk.f32.vlgmr.msra.gmra.mrb[26].mxu1 %vm1803_vm8, %v2876_v6  ;;  %v4655_v6 = vld [vmem:[%s5916_s28 + $0x100] sm:$0xff] }
 0xfd9   : > { %5426 = vmatpush3.bf16.msra.mxu1 %v5425_v3  ;;  %5164 = vmatprep.mubr.msk.f32.mxu1 %vm5703_vm2, %v5704_v27  ;;  %v4653_v3 = vld [vmem:[%s5916_s28 + $0xf0] sm:$0xff]  ;;  %v4656_v7 = vld [vmem:[%s5916_s28 + $0x108] sm:$0xff] }
 0xfda   : > { %5427 = vmatprep.subr.bf16.mxu1 %v5702_v13  ;;  %v5455_v5 = vpack.c.bf16 %v4654_v4, %v4653_v3  ;;  %v5458_v10 = vpack.c.bf16 %v4656_v7, %v4655_v6  ;;  %v4007_v7 = vld [vmem:[%s5960_s9] sm:$0xff] }
 0xfdd   : > { %5429 = vmatpush3.bf16.msra.mxu1 %v5428_v8 }
 0xfde   : > { %5430 = vmatprep.subr.bf16.mxu1 %v5702_v13 }
 0xfe1   : > { %5432 = vmatpush3.bf16.msra.mxu1 %v5431_v11  ;;  %v4657_v11 = vld [vmem:[%s5916_s28 + $0x110] sm:$0xff] }
 0xfe2   : > { %5182 = vmatprep.subr.mxu1 %v5704_v27 }
 0xfe4   : > { %5165 = vmatmul.mubr.msk.f32.vlgmr.msra.gmra.mrb[28].mxu1 %vm916_vm1, %v6011_v39 }
 0xfe5   : > { %5184 = vmatprep.mubr.msk.f32.mxu1 %vm5703_vm2, %v5704_v27 }
0x10ab   : > { %v2953_v12 = vpop.f32.mrb[26].mxu1 }
0x10ac   : > { %v6298_v15 = vadd.f32 %v2953_v12, %v6259_v30  ;;  %v5136_v16 = vpop.f32.mrb[27].mxu1  ;;  %v3045_v30 = vsel %vm3043_vm5, %v3040_v21, %v3044_v28  ;;  %v4658_v12 = vld [vmem:[%s5916_s28 + $0x118] sm:$0xff]  ;;  %v4660_v28 = vld [vmem:[%s5926_s17 + $0x5] ss:$0 sm:$0xff] }
0x10ad   : > { %v5461_v16 = vpack.c.bf16 %v4658_v12, %v4657_v11  ;;  %v4011_v12 = vld [vmem:[%s5960_s9 + $0x20] sm:$0xff] }
0x10b7   : > { %v3127_v22 = vpop.f32.mrb[28].mxu1 }
0x10b8   : > { %v3128_v24 = vadd.f32 %v4626_v20, %v3127_v22  ;;  %v5166_v25 = vpop.f32.mrb[29].mxu1 }
0x10b9   : > { %v4651_v25 = vld [vmem:[%s5921_s30 + $0x5] ss:$0 sm:$0xff] }
0x10ba   : > { %vm3131_vm3 = vcmp.ge.f32.partialorder %v3128_v24, 0.0  ;;  %v3132_v26 = vmul.f32 0.01, %v3128_v24 }
0x10bc   : > { %v3133_v31 = vsel %vm3131_vm3, %v3128_v24, %v3132_v26  ;;  %v4669_v26 = vld [vmem:[%s5936_s23 + $0x5] ss:$0 sm:$0xff]  ;;  %s6595_s23 = scalar_lea.vmem %s6594_s29, %s5889_s1 }
0x10bd   : > { %5183 = vmatpush3.xpose.msk.msra.mxu1 %vm1207_vm4, %v3133_v31  ;;  %v4678_v58 = vld [vmem:[%s6595_s23] ss:$0 sm:$0xff] }
0x10be   : > { %5187 = vmatprep.subr.mxu1 %v5704_v27 }
0x10c0   : > { %5185 = vmatmul.mubr.msk.f32.vlgmr.msra.gmra.mrb[30].mxu1 %vm1207_vm4, %v3045_v30 }
0x10c1   : > { %5188 = vmatpush3.msra.mxu1 %v3221_v57  ;;  %5189 = vmatprep.mubr.msk.f32.mxu1 %vm5703_vm2, %v5704_v27 }
0x10c2   : > { %5445 = vmatprep.subr.bf16.mxu1 %v5702_v13 }
0x1193   : > { %v3294_v59 = vpop.f32.mrb[30].mxu1 }
0x1194   : > { %v3298_v32 = vmul.f32 0.35355338, %v3294_v59  ;;  %v5186_v33 = vpop.f32.mrb[31].mxu1 }
0x1196   : > { %v3299_v34 = vadd.f32 %v3298_v32, %v6060_v17  ;;  %v4642_v17 = vld [vmem:[%s5951_s18 + $0x70] sm:$0xff] }
0x1197   : > { %5197 = vmatpush3.msra.mxu0 %v4642_v17 }
0x1198   : > { %v3300_v35 = vsel %vm1207_vm4, %v3299_v34, -inf  ;;  %5454 = vmatprep.subr.bf16.mxu0 %v5702_v13 }
0x1199   : > { %3301 = vmax.xlane.f32.xlu0 %v3300_v35 }
0x1226   : > { %v3302_v36 = vpop.xlane.xlu0 %3301 }
0x1227   : > { %v3303_v37 = vsub.f32 %v3299_v34, %v3302_v36 }
0x1229   : > { %v3304_v38 = vmul.f32 1.442695, %v3303_v37 }
0x122b   : > { %5589 = vpow2.f32 %v3304_v38 }
0x1235   : > { %v5590_v41 = vpop.eup %5589 }
0x1236   : > { %v3306_v42 = vsel %vm1207_vm4, %v5590_v41, 0.0 }
0x1237   : > { %3307 = vadd.xlane.f32.xlu1 %v3306_v42  ;;  %v5603_v42 = vld [vmem:[%s6593_s20] sm:$0xff] }
0x12c4   : > { %v3308_v40 = vpop.xlane.xlu1 %3307 }
0x12c5   : > { %5591 = vrcp.f32 %v3308_v40 }
0x12cf   : > { %v5592_v48 = vpop.eup %5591 }
0x12d0   : > { %v3310_v50 = vmul.f32 %v5592_v48, %v5590_v41  ;;  %v4674_v48 = vld [vmem:[%s5951_s18 + $0x78] sm:$0xff] }
0x12d2   : > { %5190 = vmatmul.mubr.msk.f32.vlgmr.msra.gmra.mrb[32].mxu1 %vm1207_vm4, %v3310_v50 }
0x12d3   : > { %5447 = vmatpush3.bf16.msra.mxu1 %v5446_v49  ;;  %5213 = vmatprep.mubr.msk.f32.mxu1 %vm5703_vm2, %v5704_v27  ;;  %v4675_v49 = vld [vmem:[%s5951_s18 + $0x80] sm:$0xff] }
0x12d4   : > { %5448 = vmatprep.subr.bf16.mxu1 %v5702_v13  ;;  %v5473_v50 = vpack.c.bf16 %v4675_v49, %v4674_v48 }
0x12d7   : > { %5450 = vmatpush3.bf16.msra.mxu1 %v5449_v52 }
0x12d8   : > { %5451 = vmatprep.subr.bf16.mxu1 %v5702_v13 }
0x12db   : > { %5453 = vmatpush3.bf16.msra.mxu1 %v5452_v55 }
0x12dc   : > { %5463 = vmatprep.subr.bf16.mxu1 %v5702_v13 }
0x12de   : > { %5214 = vmatmul.mubr.msk.f32.vlgmr.msra.gmra.mrb[34].mxu1 %vm916_vm1, %v6011_v39 }
0x12df   : > { %5465 = vmatpush3.bf16.msra.mxu1 %v5464_v60  ;;  %5243 = vmatprep.mubr.msk.f32.mxu1 %vm5703_vm2, %v5704_v27 }
0x12e0   : > { %5466 = vmatprep.subr.bf16.mxu1 %v5702_v13 }
0x12e3   : > { %5468 = vmatpush3.bf16.msra.mxu1 %v5467_v63 }
0x12e4   : > { %5469 = vmatprep.subr.bf16.mxu1 %v5702_v13 }
0x12e7   : > { %5471 = vmatpush3.bf16.msra.mxu1 %v5470_v2 }
0x12e8   : > { %5472 = vmatprep.subr.bf16.mxu1 %v5702_v13 }
0x12ea   : > { %5244 = vmatmul.mubr.msk.f32.vlgmr.msra.gmra.mrb[36].mxu1 %vm916_vm1, %v6011_v39 }
0x12eb   : > { %5262 = vmatprep.mubr.msk.f32.mxu1 %vm5703_vm2, %v5704_v27  ;;  %5474 = vmatpush3.bf16.msra.mxu1 %v5473_v50 }
0x12ec   : > { %5260 = vmatprep.subr.mxu1 %v5704_v27 }
0x12ef   : > { %5261 = vmatpush3.msra.mxu1 %v4676_v53 }
0x12f0   : > { %5484 = vmatprep.subr.bf16.mxu1 %v5702_v13 }
0x13a5   : > { %v3380_v8 = vpop.f32.mrb[32].mxu1 }
0x13a6   : > { %v5191_v9 = vpop.f32.mrb[33].mxu1  ;;  %5199 = vmatmul.mubr.msk.f32.vlgmr.msra.gmra.mrb[24].mxu0 %vm1803_vm8, %v3380_v8  ;;  %v4008_v8 = vld [vmem:[%s5960_s9 + $0x8] sm:$0xff] }
0x13a7   : > { %5456 = vmatpush3.bf16.msra.mxu0 %v5455_v5  ;;  %5228 = vmatprep.mubr.msk.f32.mxu0 %vm5703_vm2, %v5704_v27  ;;  %v5476_v9 = vpack.c.bf16 %v4008_v8, %v4007_v7 }
0x13a8   : > { %5457 = vmatprep.subr.bf16.mxu0 %v5702_v13 }
0x13ab   : > { %5459 = vmatpush3.bf16.msra.mxu0 %v5458_v10  ;;  %v4010_v10 = vld [vmem:[%s5960_s9 + $0x18] sm:$0xff] }
0x13ac   : > { %5460 = vmatprep.subr.bf16.mxu0 %v5702_v13 }
0x13af   : > { %5462 = vmatpush3.bf16.msra.mxu0 %v5461_v16  ;;  %v4012_v16 = vld [vmem:[%s5960_s9 + $0x28] sm:$0xff] }
0x13b0   : > { %5246 = vmatprep.subr.mxu0 %v5704_v27 }
0x13b1   : > { %v3543_v18 = vpop.f32.mrb[34].mxu1 }
0x13b2   : > { %v5215_v19 = vpop.f32.mrb[35].mxu1  ;;  %5229 = vmatmul.mubr.msk.f32.vlgmr.msra.gmra.mrb[26].mxu0 %vm916_vm1, %v6011_v39  ;;  %v3544_v29 = vadd.f32 %v4651_v25, %v3543_v18  ;;  %v5482_v18 = vpack.c.bf16 %v4012_v16, %v4011_v12 }
0x13b3   : > { %5248 = vmatprep.mubr.msk.f32.mxu0 %vm5703_vm2, %v5704_v27 }
0x13b4   : > { %v3548_v33 = vmul.f32 0.01, %v3544_v29  ;;  %vm3547_vm9 = vcmp.ge.f32.partialorder %v3544_v29, 0.0 }
0x13bd   : > { %v3719_v20 = vpop.f32.mrb[36].mxu1 }
0x13be   : > { %v5245_v21 = vpop.f32.mrb[37].mxu1  ;;  %v3720_v30 = vadd.f32 %v4669_v26, %v3719_v20 }
0x13c0   : > { %v3724_v34 = vmul.f32 0.01, %v3720_v30  ;;  %vm3723_vm10 = vcmp.ge.f32.partialorder %v3720_v30, 0.0 }
0x13c2   : > { %v3725_v36 = vsel %vm3723_vm10, %v3720_v30, %v3724_v34  ;;  %v4105_v34 = vld [vmem:[%s5965_s5 + $0x28] sm:$0xff] }
0x1479   : > { %v3457_v22 = vpop.f32.mrb[24].mxu0 }
0x147a   : > { %v3461_v23 = vadd.f32 %v3457_v22, %v6298_v15  ;;  %v5200_v24 = vpop.f32.mrb[25].mxu0  ;;  %v3549_v15 = vsel %vm3547_vm9, %v3544_v29, %v3548_v33  ;;  %v4100_v29 = vld [vmem:[%s5965_s5] sm:$0xff] }
0x147b   : > { %v4104_v33 = vld [vmem:[%s5965_s5 + $0x20] sm:$0xff] }
0x1485   : > { %v3631_v31 = vpop.f32.mrb[26].mxu0 }
0x1486   : > { %v3632_v57 = vadd.f32 %v4660_v28, %v3631_v31  ;;  %v5230_v59 = vpop.f32.mrb[27].mxu0  ;;  %v4101_v31 = vld [vmem:[%s5965_s5 + $0x8] sm:$0xff] }
0x1487   : > { %v5485_v30 = vpack.c.bf16 %v4101_v31, %v4100_v29  ;;  %v4103_v59 = vld [vmem:[%s5965_s5 + $0x18] sm:$0xff] }
0x1488   : > { %vm3635_vm7 = vcmp.ge.f32.partialorder %v3632_v57, 0.0  ;;  %v3636_v32 = vmul.f32 0.01, %v3632_v57 }
0x148a   : > { %v3637_v35 = vsel %vm3635_vm7, %v3632_v57, %v3636_v32  ;;  %v4102_v57 = vld [vmem:[%s5965_s5 + $0x10] sm:$0xff] }
0x148b   : > { %5247 = vmatpush3.xpose.msk.msra.mxu0 %vm1207_vm4, %v3637_v35  ;;  %v5488_v32 = vpack.c.bf16 %v4103_v59, %v4102_v57  ;;  %v5491_v35 = vpack.c.bf16 %v4105_v34, %v4104_v33 }
0x148c   : > { %5251 = vmatprep.subr.mxu0 %v5704_v27 }
0x148e   : > { %5249 = vmatmul.mubr.msk.f32.vlgmr.msra.gmra.mrb[28].mxu0 %vm1207_vm4, %v3549_v15  ;;  %v4681_v15 = vld [vmem:[%s897_s19] ss:$0 sm:$0xff]  ;;  %s6600_s19 = sld [smem:[#allocation9_spill]] }
0x148f   : > { %5252 = vmatpush3.msra.mxu0 %v3725_v36  ;;  %5253 = vmatprep.mubr.msk.f32.mxu0 %vm5703_vm2, %v5704_v27 }
0x1490   : > { %5475 = vmatprep.subr.bf16.mxu0 %v5702_v13 }
0x1494   : > { %p4686_p1 = scmp.ne.s32.totalorder %s6600_s19, 1 }
0x1495   : > { %s6601_s0 = sld [smem:[#allocation34_spill]] (!%p4686_p1)  ;;  %s6602_s27 = sld [smem:[#allocation35_spill]] (!%p4686_p1) }
0x1561   : > { %v3798_v37 = vpop.f32.mrb[28].mxu0 }
0x1562   : > { %v3802_v38 = vmul.f32 0.35355338, %v3798_v37  ;;  %v5250_v41 = vpop.f32.mrb[29].mxu0 }
0x1564   : > { %v3803_v43 = vadd.f32 %v5603_v42, %v3802_v38 }
0x1566   : > { %v3804_v44 = vsel %vm1207_vm4, %v3803_v43, -inf }
0x1567   : > { %3805 = vmax.xlane.f32.xlu0 %v3804_v44 }
0x15f4   : > { %v3806_v45 = vpop.xlane.xlu0 %3805 }
0x15f5   : > { %v3807_v17 = vsub.f32 %v3803_v43, %v3806_v45 }
0x15f7   : > { %v3808_v40 = vmul.f32 1.442695, %v3807_v17  ;;  %v4684_v17 = vld [vmem:[%s905_s7] ss:$0 sm:$0xff] }
0x15f9   : > { %5593 = vpow2.f32 %v3808_v40 }
0x1603   : > { %v5594_v46 = vpop.eup %5593 }
0x1604   : > { %v3810_v47 = vsel %vm1207_vm4, %v5594_v46, 0.0 }
0x1605   : > { %3811 = vadd.xlane.f32.xlu1 %v3810_v47 }
0x1692   : > { %v3812_v51 = vpop.xlane.xlu1 %3811 }
0x1693   : > { %5595 = vrcp.f32 %v3812_v51 }
0x169d   : > { %v5596_v14 = vpop.eup %5595 }
0x169e   : > { %v3814_v52 = vmul.f32 %v5596_v14, %v5594_v46 }
0x16a0   : > { %5254 = vmatmul.mubr.msk.f32.vlgmr.msra.gmra.mrb[30].mxu0 %vm1207_vm4, %v3814_v52 }
0x16a1   : > { %5277 = vmatprep.mubr.msk.f32.mxu0 %vm5703_vm2, %v5704_v27  ;;  %5477 = vmatpush3.bf16.msra.mxu0 %v5476_v9 }
0x16a2   : > { %5478 = vmatprep.subr.bf16.mxu0 %v5702_v13 }
0x1773   : > { %v3884_v54 = vpop.f32.mrb[30].mxu0 }
0x1774   : > { %v5255_v55 = vpop.f32.mrb[31].mxu0  ;;  %5263 = vmatmul.mubr.msk.f32.vlgmr.msra.gmra.mrb[38].mxu1 %vm1803_vm8, %v3884_v54 }
0x1775   : > { %5292 = vmatprep.mubr.msk.f32.mxu1 %vm5703_vm2, %v5704_v27  ;;  %5486 = vmatpush3.bf16.msra.mxu1 %v5485_v30 }
0x1776   : > { %5487 = vmatprep.subr.bf16.mxu1 %v5702_v13 }
0x1779   : > { %5489 = vmatpush3.bf16.msra.mxu1 %v5488_v32 }
0x177a   : > { %5490 = vmatprep.subr.bf16.mxu1 %v5702_v13 }
0x177d   : > { %5492 = vmatpush3.bf16.msra.mxu1 %v5491_v35 }
0x1847   : > { %v3961_v56 = vpop.f32.mrb[38].mxu1 }
0x1848   : > { %v3965_v60 = vadd.f32 %v3961_v56, %v3461_v23  ;;  %v5264_v61 = vpop.f32.mrb[39].mxu1  ;;  %v4679_v23 = vld [vmem:[%s6596_s6] ss:$0 sm:$0xff] }
0x184a   : > { %v3973_v62 = vadd.f32 %v4678_v58, %v3965_v60 }
0x184c   : > { %v3975_v63 = vmul.f32 0.01, %v3973_v62  ;;  %vm3974_vm4 = vcmp.ge.f32.partialorder %v3973_v62, 0.0 }
0x184e   : > { %v3976_v0 = vsel %vm3974_vm4, %v3973_v62, %v3975_v63 }
0x184f   : > { %v3977_v1 = vadd.f32 %v3976_v0, %v6011_v39  ;;  %v4009_v39 = vld [vmem:[%s5960_s9 + $0x10] sm:$0xff]  ;;  %s6598_s9 = scalar_lea.vmem %s6597_s13, %s5889_s1 }
0x1850   : > { %v5479_v11 = vpack.c.bf16 %v4010_v10, %v4009_v39  ;;  %v4680_v25 = vld [vmem:[%s6598_s9] ss:$0 sm:$0xff] }
0x1851   : > { %v3980_v27 = vsel %vm916_vm1, %v3977_v1, 0.0 }
0x1852   : > { %3981 = vadd.xlane.f32.xlu0 %v3980_v27  ;;  %5480 = vmatpush3.bf16.msra.mxu0 %v5479_v11 }
0x1853   : > { %5481 = vmatprep.subr.bf16.mxu0 %v5702_v13 }
0x1856   : > { %5483 = vmatpush3.bf16.msra.mxu0 %v5482_v18 }
0x18df   : > { %v3982_v2 = vpop.xlane.xlu0 %3981 }
0x18e0   : > { %v3983_v3 = vmul.f32 0.020833334, %v3982_v2  ;;  %v4688_v2 = vld [vmem:[%s6602_s27] ss:$0 sm:$0xff] (!%p4686_p1) }
0x18e2   : > { %v3984_v4 = vsub.f32 %v3977_v1, %v3983_v3  ;;  %v4687_v1 = vld [vmem:[%s6601_s0] ss:$0 sm:$0xff] (!%p4686_p1) }
0x18e4   : > { %v3985_v5 = vmul.f32 %v3984_v4, %v3984_v4 }
0x18e6   : > { %v3986_v6 = vsel %vm916_vm1, %v3985_v5, 0.0 }
0x18e7   : > { %3987 = vadd.xlane.f32.xlu1 %v3986_v6 }
0x1974   : > { %v3988_v19 = vpop.xlane.xlu1 %3987 }
0x1975   : > { %v3989_v20 = vmul.f32 0.020833334, %v3988_v19 }
0x1977   : > { %v3990_v21 = vadd.f32 1e-05, %v3989_v20 }
0x1979   : > { %5597 = vrsqrt.f32 %v3990_v21 }
0x1983   : > { %v5598_v22 = vpop.eup %5597 }
0x1984   : > { %v3992_v24 = vmul.f32 %v5598_v22, %v3984_v4 }
0x1986   : > { %v3999_v26 = vmul.f32 %v4679_v23, %v3992_v24 }
0x1988   : > { %v4006_v28 = vadd.f32 %v4680_v25, %v3999_v26 }
0x198a   : > { %5278 = vmatmul.mubr.msk.f32.vlgmr.msra.gmra.mrb[32].mxu0 %vm916_vm1, %v4006_v28 }
0x1a5d   : > { %v4089_v36 = vpop.f32.mrb[32].mxu0 }
0x1a5e   : > { %v4090_v37 = vadd.f32 %v4681_v15, %v4089_v36  ;;  %v5279_v38 = vpop.f32.mrb[33].mxu0 }
0x1a60   : > { %v4094_v41 = vmul.f32 1.442695, %v4090_v37  ;;  %vm4093_vm2 = vcmp.gt.f32.partialorder %v4090_v37, 0.0 }
0x1a62   : > { %5599 = vpow2.f32 %v4094_v41 }
0x1a6c   : > { %v5600_v42 = vpop.eup %5599 }
0x1a6d   : > { %v4683_v43 = vadd.f32 -1.0, %v5600_v42 }
0x1a6f   : > { %v4097_v44 = vmul.f32 1.6732632, %v4683_v43 }
0x1a71   : > { %v4098_v13 = vsel %vm4093_vm2, %v4090_v37, %v4097_v44 }
0x1a72   : > { %v4099_v45 = vmul.f32 1.050701, %v4098_v13 }
0x1a74   : > { %5293 = vmatmul.mubr.msk.f32.vlgmr.msra.gmra.mrb[40].mxu1 %vm916_vm1, %v4099_v45 }
0x1b47   : > { %v4182_v40 = vpop.f32.mrb[40].mxu1 }
0x1b48   : > { %v4183_v46 = vadd.f32 %v4684_v17, %v4182_v40  ;;  %v5294_v47 = vpop.f32.mrb[41].mxu1 }
0x1b4a   : > { %v4187_v48 = vmul.f32 0.70710677, %v4183_v46  ;;  %v4186_v50 = vmul.f32 0.5, %v4183_v46 }
0x1b4c   : > { %5601 = verf.f32 %v4187_v48 }
0x1b56   : > { %v5602_v49 = vpop.eup %5601 }
0x1b57   : > { %v4189_v51 = vadd.f32 1.0, %v5602_v49  ;;  %4196 = sbr.rel (%p4686_p1) target bundleno = 7319 (0x1c97), region = 108 }
0x1b59   : > { %v4190_v14 = vmul.f32 %v4189_v51, %v4186_v50 }
0x1b5b   : > { %v4191_v52 = vadd.f32 %v4190_v14, %v4006_v28 }
0x1b5d   : > { %4192 = vst.msk [vmem:[#allocation2] sm:$0xff] %vm916_vm1, %v4191_v52  ;;  %v4199_v53 = vsel (!%p4686_p1), %vm916_vm1, %v4191_v52, 0.0 }
0x1b5e   : > { %4200 = vadd.xlane.f32.xlu0 %v4199_v53 }
0x1beb   : > { %v4201_v54 = vpop.xlane.xlu0 %4200 }
0x1bec   : > { %v4202_v55 = vmul.f32 0.020833334, %v4201_v54 }
0x1bee   : > { %v4203_v56 = vsub.f32 %v4191_v52, %v4202_v55 }
0x1bf0   : > { %v4204_v58 = vmul.f32 %v4203_v56, %v4203_v56 }
0x1bf2   : > { %v4205_v60 = vsel %vm916_vm1, %v4204_v58, 0.0 }
0x1bf3   : > { %4206 = vadd.xlane.f32.xlu0 %v4205_v60 }
0x1c80   : > { %v4207_v61 = vpop.xlane.xlu0 %4206 }
0x1c81   : > { %v4208_v62 = vmul.f32 0.020833334, %v4207_v61 }
0x1c83   : > { %v4209_v63 = vadd.f32 1e-05, %v4208_v62 }
0x1c85   : > { %5604 = vrsqrt.f32 %v4209_v63 }
0x1c8f   : > { %v5605_v0 = vpop.eup %5604 }
0x1c90   : > { %v4211_v27 = vmul.f32 %v5605_v0, %v4203_v56 }
0x1c92   : > { %v4218_v3 = vmul.f32 %v4687_v1, %v4211_v27 }
0x1c94   : > { %v4225_v4 = vadd.f32 %v4688_v2, %v4218_v3 }
0x1c96   : > { %4226 = vst.msk [vmem:[%s838_s11] sm:$0xff] %vm916_vm1, %v4225_v4 }
0x1c97 PF: > { %s6603_s3 = sld [smem:[#allocation10_spill]]  ;;  %s6604_s28 = sld [smem:[#allocation7_spill]] }
0x1c98   : > { %s6606_s18 = sld [smem:[#allocation36_spill]]  ;;  %s4241_s6 = sshll.u32 %s838_s11, 4  ;;  %s4242_s6 = int_to_ptr.vmem [resolvable:$true] %s4241_s6 }
0x1c99   : > { %s5606_s13 = scalar_lea.vmem %s4242_s6, 128  ;;  %s5705_s9 = smov [#allocation3]  }
0x1c9a   : > { %p5607_p2 = scmp.ne.s32.totalorder %s4242_s6, %s5606_s13  ;;  %s5610_s4 = sshll.u32 %s5705_s9, 4  ;;  %s5611_s4 = int_to_ptr.vmem [resolvable:$false] %s5610_s4 }
0x1c9b   : > { %s5612_s2 = scalar_lea.vmem %s5611_s4, 256  ;;  %p5613_p6 = scmp.lt.s32.totalorder %s4242_s6, %s5611_s4 }
0x1c9c   : > { %p5608_p4 = pnand %p5607_p2, %p5860_p3  ;;  %p5614_p7 = scmp.lt.s32.totalorder %s5612_s2, %s5606_s13 }
0x1c9d   : > { %s4690_s17 = sshll.u32 %s6603_s3, 7  ;;  %s6607_s26 = sand.u32 1, %s6604_s28  }
0x1c9e   : > { %s6453_s22 = scalar_lea.hbm %s6606_s18, %s4690_s17  ;;  %s4228_s8 = scalar_lea.sflag [#allocation4], %s6607_s26 }
0x1c9f   : > { %p5609_p5 = pneg %p5608_p4  ;;  %p5615_p8 = por %p5614_p7, %p5613_p6 }
0x1ca1   : > { %p5616_p10 = pnand %p5615_p8, %p5609_p5 }
0x1ca3   : > { %5619 = shalt.err (!%p5616_p10)
}
0x1ca4   : > { %s5620_s25 = scalar_lea.hbm %s6453_s22, 128  ;;  %s5624_s21 = scalar_lea.hbm %s6606_s18, 256 }
0x1ca5   : > { %p5621_p11 = scmp.ne.s32.totalorder %s6453_s22, %s5620_s25  ;;  %p5625_p0 = scmp.lt.u32.totalorder %s6453_s22, %s6606_s18 }
0x1ca6   : > { %p5626_p1 = scmp.lt.u32.totalorder %s5624_s21, %s5620_s25  ;;  %p5628_p4 = scmp.lt.u32.totalorder %s5620_s25, %s6453_s22 }
0x1ca7   : > { %p5622_p12 = pnand %p5621_p11, %p5860_p3 }
0x1ca8   : > { %p5627_p2 = por %p5626_p1, %p5625_p0 }
0x1ca9   : > { %p5623_p13 = pneg %p5622_p12 }
0x1caa   : > { %p5629_p5 = por %p5628_p4, %p5627_p2 }
0x1cac   : > { %p5630_p6 = pnand %p5629_p5, %p5623_p13 }
0x1cae   : > { %5633 = shalt.err (!%p5630_p6)
}
0x1caf   : > { %5497 = dma.vmem_to_hbm [thread:$0]  (%p5860_p3), %s4242_s6, 128, %s6453_s22, %s4228_s8  }
0x1cb0 PF: > { %s6608_s1 = sld [smem:[#allocation13_spill]]  ;;  %s6609_s7 = sld [smem:[#allocation6_spill]] }
0x1cb6   : > { %p5503_p7 = scmp.ge.s32.totalorder %s6608_s1, 2  ;;  %s4253_s14 = sand.u32 1, %s6609_s7  }
0x1cb7   : > { %s4254_s24 = scalar_lea.sflag [#allocation4], %s4253_s14 }
0x1cb8   : > { %p5500_p8 = pnand %p5503_p7, %p5870_p9 }
0x1cba   : > { %5667 = dma.done.wait (!%p5500_p8), %s4254_s24, 128  }
0x1cbb   : > { %5669 = vsyncadd (!%p5500_p8), %s4254_s24, 4294967168  ;;  %s33_s26 = sadd.s32 1, %s6608_s1   ;;  %s6611_s1 = sld [smem:[#allocation7_spill]] }
0x1cbc   : > { %p30_p10 = scmp.ge.s32.totalorder %s33_s26, 6   ;;  %s6612_s22 = sld [smem:[#allocation8_spill]] }
0x1cbd   : > { %s6613_s23 = sld [smem:[#allocation18_spill]]  ;;  %s6614_s24 = sld [smem:[#allocation11_spill]] }
0x1cbe   : > { %s6615_s2 = sld [smem:[#allocation12_spill]]  ;;  %s6616_s25 = sld [smem:[#allocation14_spill]] }
0x1cbf   : > { %s6617_s3 = sld [smem:[#allocation16_spill]]  ;;  %32 = sbr.rel (!%p30_p10) target bundleno = 24 (0x18), region = 226 }
0x1cc6   :  { %4259 = vsyncpa [#allocation4], 1 }
0x1cc7   :  { %4261 = vsyncpa [#allocation4 + $0x1], 1 }

</bundles_post_ra>
